<compile_context>
chip_gen: v7x
topology: tpu7x:2x2x1
jax: 0.10.0
libtpu: 0.0.40
codegen_flags: <defaults>
</compile_context>

<pallas_src>
import math
from functools import partial

import numpy as np
import jax
import jax.numpy as jnp
from jax import lax
from jax.experimental import pallas as pl
from jax.experimental.pallas import tpu as pltpu

# ---------------- model hyper-params (small synthetic ESM2) -----------------
VOCAB = 33          # ESM alphabet size
HDIM = 32           # embedding dim
NHEAD = 4
HEAD_DIM = HDIM // NHEAD
FFN = 4 * HDIM      # ESM2 uses 4x
NLAYERS = 2
B, T = 2, 8         # T includes BOS/EOS tokens
LN_EPS = 1e-5
MASK_RATIO_TRAIN = 0.15 * 0.8   # ESM2 token-dropout rescale constant


# --------------------------- in-kernel helpers -------------------------------
def _layernorm(x, g, b):
    # f32 statistics on the VPU; g/b are (1, D) and broadcast over rows.
    mu = jnp.mean(x, axis=-1, keepdims=True)
    var = jnp.mean(jnp.square(x - mu), axis=-1, keepdims=True)
    return (x - mu) * lax.rsqrt(var + LN_EPS) * g + b


_ERF_P = 0.3275911
_ERF_A = (0.254829592, -0.284496736, 1.421413741, -1.453152027, 1.061405429)


def _erf(x):
    # Abramowitz & Stegun 7.1.26 rational approximation of erf (|err| < 1.5e-7).
    # Uses only mul/add/div/exp, all with guaranteed Mosaic lowerings; matches the
    # exact-erf GELU of the PyTorch reference far inside the bf16-matmul tolerance.
    a1, a2, a3, a4, a5 = _ERF_A
    sgn = jnp.where(x >= 0.0, 1.0, -1.0)
    ax = jnp.abs(x)
    t = 1.0 / (1.0 + _ERF_P * ax)
    poly = ((((a5 * t + a4) * t + a3) * t + a2) * t + a1) * t
    return sgn * (1.0 - poly * jnp.exp(-(ax * ax)))


def _gelu(x):
    # exact (erf-style) GELU, matching esm.modules.gelu; f32 on the VPU/EUP.
    return x * 0.5 * (1.0 + _erf(x * (1.0 / math.sqrt(2.0))))


def _mm(a, b):
    # bf16 operands on the MXU, f32 accumulation.
    return jnp.dot(a.astype(jnp.bfloat16), b.astype(jnp.bfloat16),
                   preferred_element_type=jnp.float32)


# ------------------------------ fused kernel ---------------------------------
def _fused_esm_kernel(x_ref, cos_ref, sin_ref, rot_ref, bid_col_ref, bid_row_ref,
                      ln1g_ref, ln1b_ref, wqkv_ref, bqkv_ref, wo_ref, bo_ref,
                      ln2g_ref, ln2b_ref, w1_ref, b1_ref, w2_ref, b2_ref,
                      lnfg_ref, lnfb_ref, o_ref, *, n_heads, head_dim):
    """Entire ESM2 encoder forward on one VMEM-resident block.

    x_ref:        (B*T, D) token embeddings (already token-dropout rescaled)
    cos/sin:      (B*T, D) rotary tables, pre-tiled across heads
    rot_ref:      (D, D) block-diagonal matrix s.t. rotate_half(x) == x @ rot per head
    bid_col/row:  (B*T, 1) / (1, B*T) f32 batch ids -> in-kernel block-diagonal mask
    per-layer params stacked along a leading NLAYERS axis
    """
    n_layers = wqkv_ref.shape[0]
    bt, d_model = x_ref.shape

    # ---- hoisted loop invariants (read/broadcast once) ----
    cos = cos_ref[...]                                    # (BT, D)
    sin = sin_ref[...]
    rot = rot_ref[...].astype(jnp.bfloat16)               # 0/+-1 -> exact in bf16
    # block-diagonal batch mask from O(BT) batch-id vectors (no (BT,BT) HBM table)
    neg_mask = jnp.where(bid_col_ref[...] == bid_row_ref[...], 0.0, -1e30)  # (BT, BT)
    neg_mask = neg_mask[None, :, :]                       # broadcast over heads

    x = x_ref[...]                                        # (BT, D) f32, stays resident

    for li in range(n_layers):                            # static unroll (NLAYERS=2)
        # ---------------- self-attention block (pre-LN) ----------------
        xn = _layernorm(x, ln1g_ref[li], ln1b_ref[li])
        # fused QKV projection (q weights/bias pre-scaled by head_dim**-0.5);
        # kept as a register value and split once -> no scratch round trip.
        qkv = _mm(xn, wqkv_ref[li]) + bqkv_ref[li]        # (BT, 3D)
        q = qkv[:, :d_model]
        k = qkv[:, d_model:2 * d_model]
        v = qkv[:, 2 * d_model:]

        # rotary on the full slabs: rotate_half(x) == x @ rot (block-diag), one MXU
        # push per slab instead of per head; bf16 operands, f32 accumulation.
        q = q * cos + jnp.dot(q.astype(jnp.bfloat16), rot,
                              preferred_element_type=jnp.float32) * sin
        k = k * cos + jnp.dot(k.astype(jnp.bfloat16), rot,
                              preferred_element_type=jnp.float32) * sin

        # split heads once into a leading batch dim (value slices, stacked major-axis)
        q3 = jnp.stack([q[:, h * head_dim:(h + 1) * head_dim]
                        for h in range(n_heads)], axis=0).astype(jnp.bfloat16)  # (H,BT,d)
        k3 = jnp.stack([k[:, h * head_dim:(h + 1) * head_dim]
                        for h in range(n_heads)], axis=0).astype(jnp.bfloat16)
        v3 = jnp.stack([v[:, h * head_dim:(h + 1) * head_dim]
                        for h in range(n_heads)], axis=0).astype(jnp.bfloat16)

        # all heads in one batched matmul (bf16 operands, f32 accumulation)
        s = jnp.einsum('hqd,hkd->hqk', q3, k3,
                       preferred_element_type=jnp.float32)                       # (H,BT,BT)
        s = s + neg_mask                                  # keep attention within sequence
        s = s - jnp.max(s, axis=-1, keepdims=True)
        p = jnp.exp(s)
        p = p * pl.reciprocal(jnp.sum(p, axis=-1, keepdims=True), approx=True)
        o3 = jnp.einsum('hqk,hkd->hqd', p.astype(jnp.bfloat16), v3,
                        preferred_element_type=jnp.float32)                      # (H,BT,d)

        # concat heads back to (BT, D); single lane-dense output projection
        attn = jnp.concatenate([o3[h] for h in range(n_heads)], axis=-1)         # (BT, D)
        x = x + _mm(attn, wo_ref[li]) + bo_ref[li]

        # ---------------- feed-forward block (pre-LN, erf GELU) ----------------
        xn = _layernorm(x, ln2g_ref[li], ln2b_ref[li])
        h1 = _gelu(_mm(xn, w1_ref[li]) + b1_ref[li])
        x = x + _mm(h1, w2_ref[li]) + b2_ref[li]

    # emb_layer_norm_after -> representations[num_layers]
    o_ref[...] = _layernorm(x, lnfg_ref[...], lnfb_ref[...])


# -------------------- rotary / mask tables (compile-time constants) ----------
def _build_tables(b, t):
    half = HEAD_DIM // 2
    inv_freq = 1.0 / (10000.0 ** (np.arange(0, HEAD_DIM, 2, dtype=np.float64) / HEAD_DIM))
    pos = np.arange(t, dtype=np.float64)
    freqs = np.outer(pos, inv_freq)                       # (T, head_dim/2)
    emb = np.concatenate([freqs, freqs], axis=-1)         # (T, head_dim)
    cos = np.cos(emb).astype(np.float32)
    sin = np.sin(emb).astype(np.float32)
    # tile to (B*T, D): same table for every sequence (row = b*T + t) and every head
    cos_full = np.tile(np.tile(cos, (b, 1)), (1, NHEAD))
    sin_full = np.tile(np.tile(sin, (b, 1)), (1, NHEAD))

    # rotate_half(x) == x @ rot for a row vector x of length head_dim
    rot = np.zeros((HEAD_DIM, HEAD_DIM), np.float32)
    for i in range(half):
        rot[i + half, i] = -1.0        # out[i]        = -x[i + half]
        rot[i, i + half] = 1.0         # out[i + half] =  x[i]
    rot_full = np.kron(np.eye(NHEAD, dtype=np.float32), rot)   # (D, D) block diagonal

    # O(BT) batch-id vectors; the (BT, BT) block-diagonal mask is rebuilt in-kernel
    bid = (np.arange(b * t) // t).astype(np.float32)
    bid_col = bid.reshape(b * t, 1)
    bid_row = bid.reshape(1, b * t)

    return {"cos": jnp.asarray(cos_full), "sin": jnp.asarray(sin_full),
            "rot": jnp.asarray(rot_full),
            "bid_col": jnp.asarray(bid_col), "bid_row": jnp.asarray(bid_row)}


# ------------------------------ parameters ------------------------------------
def init_params(key):
    # TODO(synk): pretrained ESM2 checkpoint weights are not loadable in-script;
    # random init with identical structure.
    def normal(k, shape, std=0.02):
        return std * jax.random.normal(k, shape, dtype=jnp.float32)

    scaling = HEAD_DIM ** -0.5
    keys = jax.random.split(key, 1 + NLAYERS)
    embed = normal(keys[0], (VOCAB, HDIM))

    wqkv, wo, w1, w2 = [], [], [], []
    for li in range(NLAYERS):
        lk = jax.random.split(keys[1 + li], 6)
        wq = normal(lk[0], (HDIM, HDIM))
        wk = normal(lk[1], (HDIM, HDIM))
        wv = normal(lk[2], (HDIM, HDIM))
        # fold the 1/sqrt(head_dim) attention scaling into the q projection
        # (the q bias would need the same scaling; it is zero here)
        wqkv.append(jnp.concatenate([wq * scaling, wk, wv], axis=1))   # (D, 3D)
        wo.append(normal(lk[3], (HDIM, HDIM)))
        w1.append(normal(lk[4], (HDIM, FFN)))
        w2.append(normal(lk[5], (FFN, HDIM)))

    ones_ld = jnp.ones((NLAYERS, 1, HDIM), jnp.float32)
    zeros_ld = jnp.zeros((NLAYERS, 1, HDIM), jnp.float32)
    return {
        "embed": embed,
        "ln1_g": ones_ld, "ln1_b": zeros_ld,
        "wqkv": jnp.stack(wqkv),                                   # (L, D, 3D)
        "bqkv": jnp.zeros((NLAYERS, 1, 3 * HDIM), jnp.float32),
        "wo": jnp.stack(wo), "bo": zeros_ld,
        "ln2_g": ones_ld, "ln2_b": zeros_ld,
        "w1": jnp.stack(w1), "b1": jnp.zeros((NLAYERS, 1, FFN), jnp.float32),
        "w2": jnp.stack(w2), "b2": zeros_ld,
        "lnf_g": jnp.ones((1, HDIM), jnp.float32),
        "lnf_b": jnp.zeros((1, HDIM), jnp.float32),
    }


# ------------------------------ forward pass -----------------------------------
@partial(jax.jit, static_argnames=("remove_start_end",))
def esm_backbone_forward(tokens, params, remove_start_end=True):
    b, t = tokens.shape

    # embed_tokens (embed_scale = 1 in ESM2) — gather stays in plain JAX
    x = jnp.take(params["embed"], tokens, axis=0)            # (B, T, D)

    # ESM2 token-dropout rescale; no <mask> tokens present -> observed ratio 0
    # TODO(synk): padding-mask / observed-mask-ratio handling skipped (no pad/mask tokens)
    x = x * (1.0 - MASK_RATIO_TRAIN)
    x = x.reshape(b * t, HDIM)

    tables = _build_tables(b, t)                              # numpy -> constants under jit

    kernel = partial(_fused_esm_kernel, n_heads=NHEAD, head_dim=HEAD_DIM)
    feat = pl.pallas_call(
        kernel,
        out_shape=jax.ShapeDtypeStruct((b * t, HDIM), jnp.float32),
        compiler_params=pltpu.CompilerParams(vmem_limit_bytes=32 * 1024 * 1024),
    )(x, tables["cos"], tables["sin"], tables["rot"],
      tables["bid_col"], tables["bid_row"],
      params["ln1_g"], params["ln1_b"], params["wqkv"], params["bqkv"],
      params["wo"], params["bo"], params["ln2_g"], params["ln2_b"],
      params["w1"], params["b1"], params["w2"], params["b2"],
      params["lnf_g"], params["lnf_b"])

    x = feat.reshape(b, t, HDIM)
    if remove_start_end:
        x = x[:, 1:-1]                                        # drop SOS/EOS

    return {"bb_feat": x}


# ------------------------------ main --------------------------------------------
if __name__ == "__main__":
    key = jax.random.PRNGKey(0)
    pkey, tkey = jax.random.split(key)

    params = init_params(pkey)

    # tokens: BOS(0) ... residues(4..23) ... EOS(2); no padding / mask tokens
    tokens = jax.random.randint(tkey, (B, T), 4, 24, dtype=jnp.int32)
    tokens = tokens.at[:, 0].set(0).at[:, -1].set(2)

    out = esm_backbone_forward(tokens, params, remove_start_end=True)
    feat = jax.block_until_ready(out["bb_feat"])

    assert feat.shape == (B, T - 2, HDIM), feat.shape
    assert bool(jnp.all(jnp.isfinite(feat)))
    print("KERNEL_OK")
</pallas_src>

<mosaic_0001>
module attributes {stable_mosaic.version = 11 : i64} {
  func.func @_fused_esm_kernel(%arg0: memref<16x32xf32, #tpu.memory_space<vmem>>, %arg1: memref<16x32xf32, #tpu.memory_space<vmem>>, %arg2: memref<16x32xf32, #tpu.memory_space<vmem>>, %arg3: memref<32x32xf32, #tpu.memory_space<vmem>>, %arg4: memref<16x1xf32, #tpu.memory_space<vmem>>, %arg5: memref<1x16xf32, #tpu.memory_space<vmem>>, %arg6: memref<2x1x32xf32, #tpu.memory_space<vmem>>, %arg7: memref<2x1x32xf32, #tpu.memory_space<vmem>>, %arg8: memref<2x32x96xf32, #tpu.memory_space<vmem>>, %arg9: memref<2x1x96xf32, #tpu.memory_space<vmem>>, %arg10: memref<2x32x32xf32, #tpu.memory_space<vmem>>, %arg11: memref<2x1x32xf32, #tpu.memory_space<vmem>>, %arg12: memref<2x1x32xf32, #tpu.memory_space<vmem>>, %arg13: memref<2x1x32xf32, #tpu.memory_space<vmem>>, %arg14: memref<2x32x128xf32, #tpu.memory_space<vmem>>, %arg15: memref<2x1x128xf32, #tpu.memory_space<vmem>>, %arg16: memref<2x128x32xf32, #tpu.memory_space<vmem>>, %arg17: memref<2x1x32xf32, #tpu.memory_space<vmem>>, %arg18: memref<1x32xf32, #tpu.memory_space<vmem>>, %arg19: memref<1x32xf32, #tpu.memory_space<vmem>>, %arg20: memref<16x32xf32, #tpu.memory_space<vmem>>) attributes {dimension_semantics = [], scalar_prefetch = 0 : i64, scratch_operands = 0 : i64, tpu.core_type = #tpu.core_type<tc>} {
    %c0 = arith.constant 0 : index
    %c0_0 = arith.constant 0 : index
    %0 = vector.load %arg1[%c0, %c0_0] : memref<16x32xf32, #tpu.memory_space<vmem>>, vector<16x32xf32>
    %c0_1 = arith.constant 0 : index
    %c0_2 = arith.constant 0 : index
    %1 = vector.load %arg2[%c0_1, %c0_2] : memref<16x32xf32, #tpu.memory_space<vmem>>, vector<16x32xf32>
    %c0_3 = arith.constant 0 : index
    %c0_4 = arith.constant 0 : index
    %2 = vector.load %arg3[%c0_3, %c0_4] : memref<32x32xf32, #tpu.memory_space<vmem>>, vector<32x32xf32>
    %3 = arith.truncf %2 : vector<32x32xf32> to vector<32x32xbf16>
    %c0_5 = arith.constant 0 : index
    %c0_6 = arith.constant 0 : index
    %4 = vector.load %arg4[%c0_5, %c0_6] : memref<16x1xf32, #tpu.memory_space<vmem>>, vector<16x1xf32>
    %c0_7 = arith.constant 0 : index
    %c0_8 = arith.constant 0 : index
    %5 = vector.load %arg5[%c0_7, %c0_8] : memref<1x16xf32, #tpu.memory_space<vmem>>, vector<1x16xf32>
    %6 = vector.broadcast %4 : vector<16x1xf32> to vector<16x16xf32>
    %7 = vector.broadcast %5 : vector<1x16xf32> to vector<16x16xf32>
    %8 = arith.cmpf oeq, %6, %7 : vector<16x16xf32>
    %cst = arith.constant 0.000000e+00 : f32
    %cst_9 = arith.constant -1.000000e+30 : f32
    %9 = vector.broadcast %cst : f32 to vector<16x16xf32>
    %10 = vector.broadcast %cst_9 : f32 to vector<16x16xf32>
    %11 = arith.select %8, %9, %10 : vector<16x16xi1>, vector<16x16xf32>
    %12 = vector.shape_cast %11 : vector<16x16xf32> to vector<1x16x16xf32>
    %c0_10 = arith.constant 0 : index
    %c0_11 = arith.constant 0 : index
    %13 = vector.load %arg0[%c0_10, %c0_11] : memref<16x32xf32, #tpu.memory_space<vmem>>, vector<16x32xf32>
    %c0_12 = arith.constant 0 : index
    %c0_13 = arith.constant 0 : index
    %c0_14 = arith.constant 0 : index
    %14 = vector.load %arg6[%c0_12, %c0_13, %c0_14] : memref<2x1x32xf32, #tpu.memory_space<vmem>>, vector<1x1x32xf32>
    %15 = vector.shape_cast %14 : vector<1x1x32xf32> to vector<1x32xf32>
    %c0_15 = arith.constant 0 : index
    %c0_16 = arith.constant 0 : index
    %c0_17 = arith.constant 0 : index
    %16 = vector.load %arg7[%c0_15, %c0_16, %c0_17] : memref<2x1x32xf32, #tpu.memory_space<vmem>>, vector<1x1x32xf32>
    %17 = vector.shape_cast %16 : vector<1x1x32xf32> to vector<1x32xf32>
    %cst_18 = arith.constant dense<0.000000e+00> : vector<16xf32>
    %18 = vector.multi_reduction <add>, %13, %cst_18 [1] : vector<16x32xf32> to vector<16xf32>
    %19 = vector.shape_cast %18 : vector<16xf32> to vector<16x1xf32>
    %cst_19 = arith.constant 3.200000e+01 : f32
    %20 = vector.broadcast %cst_19 : f32 to vector<16x1xf32>
    %21 = arith.divf %19, %20 : vector<16x1xf32>
    %22 = vector.broadcast %21 : vector<16x1xf32> to vector<16x32xf32>
    %23 = arith.subf %13, %22 : vector<16x32xf32>
    %24 = arith.mulf %23, %23 : vector<16x32xf32>
    %cst_20 = arith.constant dense<0.000000e+00> : vector<16xf32>
    %25 = vector.multi_reduction <add>, %24, %cst_20 [1] : vector<16x32xf32> to vector<16xf32>
    %26 = vector.shape_cast %25 : vector<16xf32> to vector<16x1xf32>
    %cst_21 = arith.constant 3.200000e+01 : f32
    %27 = vector.broadcast %cst_21 : f32 to vector<16x1xf32>
    %28 = arith.divf %26, %27 : vector<16x1xf32>
    %29 = vector.broadcast %21 : vector<16x1xf32> to vector<16x32xf32>
    %30 = arith.subf %13, %29 : vector<16x32xf32>
    %cst_22 = arith.constant 9.99999974E-6 : f32
    %31 = vector.broadcast %cst_22 : f32 to vector<16x1xf32>
    %32 = arith.addf %28, %31 : vector<16x1xf32>
    %33 = math.rsqrt %32 : vector<16x1xf32>
    %34 = vector.broadcast %33 : vector<16x1xf32> to vector<16x32xf32>
    %35 = arith.mulf %30, %34 : vector<16x32xf32>
    %36 = vector.broadcast %15 : vector<1x32xf32> to vector<16x32xf32>
    %37 = arith.mulf %35, %36 : vector<16x32xf32>
    %38 = vector.broadcast %17 : vector<1x32xf32> to vector<16x32xf32>
    %39 = arith.addf %37, %38 : vector<16x32xf32>
    %c0_23 = arith.constant 0 : index
    %c0_24 = arith.constant 0 : index
    %c0_25 = arith.constant 0 : index
    %40 = vector.load %arg8[%c0_23, %c0_24, %c0_25] : memref<2x32x96xf32, #tpu.memory_space<vmem>>, vector<1x32x96xf32>
    %41 = vector.shape_cast %40 : vector<1x32x96xf32> to vector<32x96xf32>
    %42 = arith.truncf %39 : vector<16x32xf32> to vector<16x32xbf16>
    %43 = arith.truncf %41 : vector<32x96xf32> to vector<32x96xbf16>
    %cst_26 = arith.constant dense<0.000000e+00> : vector<16x96xf32>
    %44 = tpu.matmul %42, %43, %cst_26 {dimension_numbers = #tpu.dot_dimension_numbers<[1], [0], [0], [1], [0, 0, 1, 1], [], []>} : vector<16x32xbf16>, vector<32x96xbf16>, vector<16x96xf32> -> vector<16x96xf32>
    %c0_27 = arith.constant 0 : index
    %c0_28 = arith.constant 0 : index
    %c0_29 = arith.constant 0 : index
    %45 = vector.load %arg9[%c0_27, %c0_28, %c0_29] : memref<2x1x96xf32, #tpu.memory_space<vmem>>, vector<1x1x96xf32>
    %46 = vector.shape_cast %45 : vector<1x1x96xf32> to vector<1x96xf32>
    %47 = vector.broadcast %46 : vector<1x96xf32> to vector<16x96xf32>
    %48 = arith.addf %44, %47 : vector<16x96xf32>
    %49 = vector.extract_strided_slice %48 {offsets = [0, 0], sizes = [16, 32], strides = [1, 1]} : vector<16x96xf32> to vector<16x32xf32>
    %50 = vector.extract_strided_slice %48 {offsets = [0, 32], sizes = [16, 32], strides = [1, 1]} : vector<16x96xf32> to vector<16x32xf32>
    %51 = vector.extract_strided_slice %48 {offsets = [0, 64], sizes = [16, 32], strides = [1, 1]} : vector<16x96xf32> to vector<16x32xf32>
    %52 = arith.mulf %49, %0 : vector<16x32xf32>
    %53 = arith.truncf %49 : vector<16x32xf32> to vector<16x32xbf16>
    %cst_30 = arith.constant dense<0.000000e+00> : vector<16x32xf32>
    %54 = tpu.matmul %53, %3, %cst_30 {dimension_numbers = #tpu.dot_dimension_numbers<[1], [0], [0], [1], [0, 0, 1, 1], [], []>} : vector<16x32xbf16>, vector<32x32xbf16>, vector<16x32xf32> -> vector<16x32xf32>
    %55 = arith.mulf %54, %1 : vector<16x32xf32>
    %56 = arith.addf %52, %55 : vector<16x32xf32>
    %57 = arith.mulf %50, %0 : vector<16x32xf32>
    %58 = arith.truncf %50 : vector<16x32xf32> to vector<16x32xbf16>
    %cst_31 = arith.constant dense<0.000000e+00> : vector<16x32xf32>
    %59 = tpu.matmul %58, %3, %cst_31 {dimension_numbers = #tpu.dot_dimension_numbers<[1], [0], [0], [1], [0, 0, 1, 1], [], []>} : vector<16x32xbf16>, vector<32x32xbf16>, vector<16x32xf32> -> vector<16x32xf32>
    %60 = arith.mulf %59, %1 : vector<16x32xf32>
    %61 = arith.addf %57, %60 : vector<16x32xf32>
    %62 = vector.extract_strided_slice %56 {offsets = [0, 0], sizes = [16, 8], strides = [1, 1]} : vector<16x32xf32> to vector<16x8xf32>
    %63 = vector.extract_strided_slice %56 {offsets = [0, 8], sizes = [16, 8], strides = [1, 1]} : vector<16x32xf32> to vector<16x8xf32>
    %64 = vector.extract_strided_slice %56 {offsets = [0, 16], sizes = [16, 8], strides = [1, 1]} : vector<16x32xf32> to vector<16x8xf32>
    %65 = vector.extract_strided_slice %56 {offsets = [0, 24], sizes = [16, 8], strides = [1, 1]} : vector<16x32xf32> to vector<16x8xf32>
    %66 = vector.shape_cast %62 : vector<16x8xf32> to vector<1x16x8xf32>
    %67 = vector.shape_cast %63 : vector<16x8xf32> to vector<1x16x8xf32>
    %68 = vector.shape_cast %64 : vector<16x8xf32> to vector<1x16x8xf32>
    %69 = vector.shape_cast %65 : vector<16x8xf32> to vector<1x16x8xf32>
    %70 = tpu.concatenate %66, %67, %68, %69 in 0 : vector<1x16x8xf32>, vector<1x16x8xf32>, vector<1x16x8xf32>, vector<1x16x8xf32> -> vector<4x16x8xf32>
    %71 = arith.truncf %70 : vector<4x16x8xf32> to vector<4x16x8xbf16>
    %72 = vector.extract_strided_slice %61 {offsets = [0, 0], sizes = [16, 8], strides = [1, 1]} : vector<16x32xf32> to vector<16x8xf32>
    %73 = vector.extract_strided_slice %61 {offsets = [0, 8], sizes = [16, 8], strides = [1, 1]} : vector<16x32xf32> to vector<16x8xf32>
    %74 = vector.extract_strided_slice %61 {offsets = [0, 16], sizes = [16, 8], strides = [1, 1]} : vector<16x32xf32> to vector<16x8xf32>
    %75 = vector.extract_strided_slice %61 {offsets = [0, 24], sizes = [16, 8], strides = [1, 1]} : vector<16x32xf32> to vector<16x8xf32>
    %76 = vector.shape_cast %72 : vector<16x8xf32> to vector<1x16x8xf32>
    %77 = vector.shape_cast %73 : vector<16x8xf32> to vector<1x16x8xf32>
    %78 = vector.shape_cast %74 : vector<16x8xf32> to vector<1x16x8xf32>
    %79 = vector.shape_cast %75 : vector<16x8xf32> to vector<1x16x8xf32>
    %80 = tpu.concatenate %76, %77, %78, %79 in 0 : vector<1x16x8xf32>, vector<1x16x8xf32>, vector<1x16x8xf32>, vector<1x16x8xf32> -> vector<4x16x8xf32>
    %81 = arith.truncf %80 : vector<4x16x8xf32> to vector<4x16x8xbf16>
    %82 = vector.extract_strided_slice %51 {offsets = [0, 0], sizes = [16, 8], strides = [1, 1]} : vector<16x32xf32> to vector<16x8xf32>
    %83 = vector.extract_strided_slice %51 {offsets = [0, 8], sizes = [16, 8], strides = [1, 1]} : vector<16x32xf32> to vector<16x8xf32>
    %84 = vector.extract_strided_slice %51 {offsets = [0, 16], sizes = [16, 8], strides = [1, 1]} : vector<16x32xf32> to vector<16x8xf32>
    %85 = vector.extract_strided_slice %51 {offsets = [0, 24], sizes = [16, 8], strides = [1, 1]} : vector<16x32xf32> to vector<16x8xf32>
    %86 = vector.shape_cast %82 : vector<16x8xf32> to vector<1x16x8xf32>
    %87 = vector.shape_cast %83 : vector<16x8xf32> to vector<1x16x8xf32>
    %88 = vector.shape_cast %84 : vector<16x8xf32> to vector<1x16x8xf32>
    %89 = vector.shape_cast %85 : vector<16x8xf32> to vector<1x16x8xf32>
    %90 = tpu.concatenate %86, %87, %88, %89 in 0 : vector<1x16x8xf32>, vector<1x16x8xf32>, vector<1x16x8xf32>, vector<1x16x8xf32> -> vector<4x16x8xf32>
    %91 = arith.truncf %90 : vector<4x16x8xf32> to vector<4x16x8xbf16>
    "tpu.trace_start"() <{level = 10 : i32, message = "hqd,hkd->hqk"}> : () -> ()
    %cst_32 = arith.constant dense<0.000000e+00> : vector<4x16x16xf32>
    %92 = tpu.matmul %71, %81, %cst_32 {dimension_numbers = #tpu.dot_dimension_numbers<[2], [2], [1], [1], [0, 0, 0, 1, 1, 1], [0], [0]>} : vector<4x16x8xbf16>, vector<4x16x8xbf16>, vector<4x16x16xf32> -> vector<4x16x16xf32>
    "tpu.trace_stop"() : () -> ()
    %93 = vector.broadcast %12 : vector<1x16x16xf32> to vector<4x16x16xf32>
    %94 = arith.addf %92, %93 : vector<4x16x16xf32>
    %cst_33 = arith.constant dense<0xFF800000> : vector<4x16xf32>
    %95 = vector.multi_reduction <maximumf>, %94, %cst_33 [2] : vector<4x16x16xf32> to vector<4x16xf32>
    %96 = vector.shape_cast %95 : vector<4x16xf32> to vector<4x16x1xf32>
    %97 = vector.broadcast %96 : vector<4x16x1xf32> to vector<4x16x16xf32>
    %98 = arith.subf %94, %97 : vector<4x16x16xf32>
    %99 = math.exp %98 : vector<4x16x16xf32>
    %cst_34 = arith.constant dense<0.000000e+00> : vector<4x16xf32>
    %100 = vector.multi_reduction <add>, %99, %cst_34 [2] : vector<4x16x16xf32> to vector<4x16xf32>
    %101 = vector.shape_cast %100 : vector<4x16xf32> to vector<4x16x1xf32>
    %102 = tpu.reciprocal %101 {approx = true} : vector<4x16x1xf32> -> vector<4x16x1xf32>
    %103 = vector.broadcast %102 : vector<4x16x1xf32> to vector<4x16x16xf32>
    %104 = arith.mulf %99, %103 : vector<4x16x16xf32>
    %105 = arith.truncf %104 : vector<4x16x16xf32> to vector<4x16x16xbf16>
    "tpu.trace_start"() <{level = 10 : i32, message = "hqk,hkd->hqd"}> : () -> ()
    %cst_35 = arith.constant dense<0.000000e+00> : vector<4x16x8xf32>
    %106 = tpu.matmul %105, %91, %cst_35 {dimension_numbers = #tpu.dot_dimension_numbers<[2], [1], [1], [2], [0, 0, 0, 1, 1, 2], [0], [0]>} : vector<4x16x16xbf16>, vector<4x16x8xbf16>, vector<4x16x8xf32> -> vector<4x16x8xf32>
    "tpu.trace_stop"() : () -> ()
    %107 = vector.extract_strided_slice %106 {offsets = [0, 0, 0], sizes = [1, 16, 8], strides = [1, 1, 1]} : vector<4x16x8xf32> to vector<1x16x8xf32>
    %108 = vector.shape_cast %107 : vector<1x16x8xf32> to vector<16x8xf32>
    %109 = vector.extract_strided_slice %106 {offsets = [1, 0, 0], sizes = [1, 16, 8], strides = [1, 1, 1]} : vector<4x16x8xf32> to vector<1x16x8xf32>
    %110 = vector.shape_cast %109 : vector<1x16x8xf32> to vector<16x8xf32>
    %111 = vector.extract_strided_slice %106 {offsets = [2, 0, 0], sizes = [1, 16, 8], strides = [1, 1, 1]} : vector<4x16x8xf32> to vector<1x16x8xf32>
    %112 = vector.shape_cast %111 : vector<1x16x8xf32> to vector<16x8xf32>
    %113 = vector.extract_strided_slice %106 {offsets = [3, 0, 0], sizes = [1, 16, 8], strides = [1, 1, 1]} : vector<4x16x8xf32> to vector<1x16x8xf32>
    %114 = vector.shape_cast %113 : vector<1x16x8xf32> to vector<16x8xf32>
    %115 = tpu.concatenate %108, %110, %112, %114 in 1 : vector<16x8xf32>, vector<16x8xf32>, vector<16x8xf32>, vector<16x8xf32> -> vector<16x32xf32>
    %c0_36 = arith.constant 0 : index
    %c0_37 = arith.constant 0 : index
    %c0_38 = arith.constant 0 : index
    %116 = vector.load %arg10[%c0_36, %c0_37, %c0_38] : memref<2x32x32xf32, #tpu.memory_space<vmem>>, vector<1x32x32xf32>
    %117 = vector.shape_cast %116 : vector<1x32x32xf32> to vector<32x32xf32>
    %118 = arith.truncf %115 : vector<16x32xf32> to vector<16x32xbf16>
    %119 = arith.truncf %117 : vector<32x32xf32> to vector<32x32xbf16>
    %cst_39 = arith.constant dense<0.000000e+00> : vector<16x32xf32>
    %120 = tpu.matmul %118, %119, %cst_39 {dimension_numbers = #tpu.dot_dimension_numbers<[1], [0], [0], [1], [0, 0, 1, 1], [], []>} : vector<16x32xbf16>, vector<32x32xbf16>, vector<16x32xf32> -> vector<16x32xf32>
    %121 = arith.addf %13, %120 : vector<16x32xf32>
    %c0_40 = arith.constant 0 : index
    %c0_41 = arith.constant 0 : index
    %c0_42 = arith.constant 0 : index
    %122 = vector.load %arg11[%c0_40, %c0_41, %c0_42] : memref<2x1x32xf32, #tpu.memory_space<vmem>>, vector<1x1x32xf32>
    %123 = vector.shape_cast %122 : vector<1x1x32xf32> to vector<1x32xf32>
    %124 = vector.broadcast %123 : vector<1x32xf32> to vector<16x32xf32>
    %125 = arith.addf %121, %124 : vector<16x32xf32>
    %c0_43 = arith.constant 0 : index
    %c0_44 = arith.constant 0 : index
    %c0_45 = arith.constant 0 : index
    %126 = vector.load %arg12[%c0_43, %c0_44, %c0_45] : memref<2x1x32xf32, #tpu.memory_space<vmem>>, vector<1x1x32xf32>
    %127 = vector.shape_cast %126 : vector<1x1x32xf32> to vector<1x32xf32>
    %c0_46 = arith.constant 0 : index
    %c0_47 = arith.constant 0 : index
    %c0_48 = arith.constant 0 : index
    %128 = vector.load %arg13[%c0_46, %c0_47, %c0_48] : memref<2x1x32xf32, #tpu.memory_space<vmem>>, vector<1x1x32xf32>
    %129 = vector.shape_cast %128 : vector<1x1x32xf32> to vector<1x32xf32>
    %cst_49 = arith.constant dense<0.000000e+00> : vector<16xf32>
    %130 = vector.multi_reduction <add>, %125, %cst_49 [1] : vector<16x32xf32> to vector<16xf32>
    %131 = vector.shape_cast %130 : vector<16xf32> to vector<16x1xf32>
    %cst_50 = arith.constant 3.200000e+01 : f32
    %132 = vector.broadcast %cst_50 : f32 to vector<16x1xf32>
    %133 = arith.divf %131, %132 : vector<16x1xf32>
    %134 = vector.broadcast %133 : vector<16x1xf32> to vector<16x32xf32>
    %135 = arith.subf %125, %134 : vector<16x32xf32>
    %136 = arith.mulf %135, %135 : vector<16x32xf32>
    %cst_51 = arith.constant dense<0.000000e+00> : vector<16xf32>
    %137 = vector.multi_reduction <add>, %136, %cst_51 [1] : vector<16x32xf32> to vector<16xf32>
    %138 = vector.shape_cast %137 : vector<16xf32> to vector<16x1xf32>
    %cst_52 = arith.constant 3.200000e+01 : f32
    %139 = vector.broadcast %cst_52 : f32 to vector<16x1xf32>
    %140 = arith.divf %138, %139 : vector<16x1xf32>
    %141 = vector.broadcast %133 : vector<16x1xf32> to vector<16x32xf32>
    %142 = arith.subf %125, %141 : vector<16x32xf32>
    %cst_53 = arith.constant 9.99999974E-6 : f32
    %143 = vector.broadcast %cst_53 : f32 to vector<16x1xf32>
    %144 = arith.addf %140, %143 : vector<16x1xf32>
    %145 = math.rsqrt %144 : vector<16x1xf32>
    %146 = vector.broadcast %145 : vector<16x1xf32> to vector<16x32xf32>
    %147 = arith.mulf %142, %146 : vector<16x32xf32>
    %148 = vector.broadcast %127 : vector<1x32xf32> to vector<16x32xf32>
    %149 = arith.mulf %147, %148 : vector<16x32xf32>
    %150 = vector.broadcast %129 : vector<1x32xf32> to vector<16x32xf32>
    %151 = arith.addf %149, %150 : vector<16x32xf32>
    %c0_54 = arith.constant 0 : index
    %c0_55 = arith.constant 0 : index
    %c0_56 = arith.constant 0 : index
    %152 = vector.load %arg14[%c0_54, %c0_55, %c0_56] : memref<2x32x128xf32, #tpu.memory_space<vmem>>, vector<1x32x128xf32>
    %153 = vector.shape_cast %152 : vector<1x32x128xf32> to vector<32x128xf32>
    %154 = arith.truncf %151 : vector<16x32xf32> to vector<16x32xbf16>
    %155 = arith.truncf %153 : vector<32x128xf32> to vector<32x128xbf16>
    %cst_57 = arith.constant dense<0.000000e+00> : vector<16x128xf32>
    %156 = tpu.matmul %154, %155, %cst_57 {dimension_numbers = #tpu.dot_dimension_numbers<[1], [0], [0], [1], [0, 0, 1, 1], [], []>} : vector<16x32xbf16>, vector<32x128xbf16>, vector<16x128xf32> -> vector<16x128xf32>
    %c0_58 = arith.constant 0 : index
    %c0_59 = arith.constant 0 : index
    %c0_60 = arith.constant 0 : index
    %157 = vector.load %arg15[%c0_58, %c0_59, %c0_60] : memref<2x1x128xf32, #tpu.memory_space<vmem>>, vector<1x1x128xf32>
    %158 = vector.shape_cast %157 : vector<1x1x128xf32> to vector<1x128xf32>
    %159 = vector.broadcast %158 : vector<1x128xf32> to vector<16x128xf32>
    %160 = arith.addf %156, %159 : vector<16x128xf32>
    %cst_61 = arith.constant 5.000000e-01 : f32
    %161 = vector.broadcast %cst_61 : f32 to vector<16x128xf32>
    %162 = arith.mulf %160, %161 : vector<16x128xf32>
    %cst_62 = arith.constant 0.707106769 : f32
    %163 = vector.broadcast %cst_62 : f32 to vector<16x128xf32>
    %164 = arith.mulf %160, %163 : vector<16x128xf32>
    %cst_63 = arith.constant 0.000000e+00 : f32
    %165 = vector.broadcast %cst_63 : f32 to vector<16x128xf32>
    %166 = arith.cmpf oge, %164, %165 : vector<16x128xf32>
    %cst_64 = arith.constant 1.000000e+00 : f32
    %cst_65 = arith.constant -1.000000e+00 : f32
    %167 = vector.broadcast %cst_64 : f32 to vector<16x128xf32>
    %168 = vector.broadcast %cst_65 : f32 to vector<16x128xf32>
    %169 = arith.select %166, %167, %168 : vector<16x128xi1>, vector<16x128xf32>
    %170 = math.absf %164 : vector<16x128xf32>
    %cst_66 = arith.constant 0.327591091 : f32
    %171 = vector.broadcast %cst_66 : f32 to vector<16x128xf32>
    %172 = arith.mulf %171, %170 : vector<16x128xf32>
    %cst_67 = arith.constant 1.000000e+00 : f32
    %173 = vector.broadcast %cst_67 : f32 to vector<16x128xf32>
    %174 = arith.addf %173, %172 : vector<16x128xf32>
    %cst_68 = arith.constant 1.000000e+00 : f32
    %175 = vector.broadcast %cst_68 : f32 to vector<16x128xf32>
    %176 = arith.divf %175, %174 : vector<16x128xf32>
    %cst_69 = arith.constant 1.06140542 : f32
    %177 = vector.broadcast %cst_69 : f32 to vector<16x128xf32>
    %178 = arith.mulf %177, %176 : vector<16x128xf32>
    %cst_70 = arith.constant -1.45315206 : f32
    %179 = vector.broadcast %cst_70 : f32 to vector<16x128xf32>
    %180 = arith.addf %178, %179 : vector<16x128xf32>
    %181 = arith.mulf %180, %176 : vector<16x128xf32>
    %cst_71 = arith.constant 1.42141378 : f32
    %182 = vector.broadcast %cst_71 : f32 to vector<16x128xf32>
    %183 = arith.addf %181, %182 : vector<16x128xf32>
    %184 = arith.mulf %183, %176 : vector<16x128xf32>
    %cst_72 = arith.constant -0.284496725 : f32
    %185 = vector.broadcast %cst_72 : f32 to vector<16x128xf32>
    %186 = arith.addf %184, %185 : vector<16x128xf32>
    %187 = arith.mulf %186, %176 : vector<16x128xf32>
    %cst_73 = arith.constant 0.254829586 : f32
    %188 = vector.broadcast %cst_73 : f32 to vector<16x128xf32>
    %189 = arith.addf %187, %188 : vector<16x128xf32>
    %190 = arith.mulf %189, %176 : vector<16x128xf32>
    %191 = arith.mulf %170, %170 : vector<16x128xf32>
    %cst_74 = arith.constant 0.000000e+00 : f32
    %192 = vector.broadcast %cst_74 : f32 to vector<16x128xf32>
    %193 = arith.subf %192, %191 : vector<16x128xf32>
    %194 = math.exp %193 : vector<16x128xf32>
    %195 = arith.mulf %190, %194 : vector<16x128xf32>
    %cst_75 = arith.constant 1.000000e+00 : f32
    %196 = vector.broadcast %cst_75 : f32 to vector<16x128xf32>
    %197 = arith.subf %196, %195 : vector<16x128xf32>
    %198 = arith.mulf %169, %197 : vector<16x128xf32>
    %cst_76 = arith.constant 1.000000e+00 : f32
    %199 = vector.broadcast %cst_76 : f32 to vector<16x128xf32>
    %200 = arith.addf %199, %198 : vector<16x128xf32>
    %201 = arith.mulf %162, %200 : vector<16x128xf32>
    %c0_77 = arith.constant 0 : index
    %c0_78 = arith.constant 0 : index
    %c0_79 = arith.constant 0 : index
    %202 = vector.load %arg16[%c0_77, %c0_78, %c0_79] : memref<2x128x32xf32, #tpu.memory_space<vmem>>, vector<1x128x32xf32>
    %203 = vector.shape_cast %202 : vector<1x128x32xf32> to vector<128x32xf32>
    %204 = arith.truncf %201 : vector<16x128xf32> to vector<16x128xbf16>
    %205 = arith.truncf %203 : vector<128x32xf32> to vector<128x32xbf16>
    %cst_80 = arith.constant dense<0.000000e+00> : vector<16x32xf32>
    %206 = tpu.matmul %204, %205, %cst_80 {dimension_numbers = #tpu.dot_dimension_numbers<[1], [0], [0], [1], [0, 0, 1, 1], [], []>} : vector<16x128xbf16>, vector<128x32xbf16>, vector<16x32xf32> -> vector<16x32xf32>
    %207 = arith.addf %125, %206 : vector<16x32xf32>
    %c0_81 = arith.constant 0 : index
    %c0_82 = arith.constant 0 : index
    %c0_83 = arith.constant 0 : index
    %208 = vector.load %arg17[%c0_81, %c0_82, %c0_83] : memref<2x1x32xf32, #tpu.memory_space<vmem>>, vector<1x1x32xf32>
    %209 = vector.shape_cast %208 : vector<1x1x32xf32> to vector<1x32xf32>
    %210 = vector.broadcast %209 : vector<1x32xf32> to vector<16x32xf32>
    %211 = arith.addf %207, %210 : vector<16x32xf32>
    %c1 = arith.constant 1 : index
    %c0_84 = arith.constant 0 : index
    %c0_85 = arith.constant 0 : index
    %212 = vector.load %arg6[%c1, %c0_84, %c0_85] : memref<2x1x32xf32, #tpu.memory_space<vmem>>, vector<1x1x32xf32>
    %213 = vector.shape_cast %212 : vector<1x1x32xf32> to vector<1x32xf32>
    %c1_86 = arith.constant 1 : index
    %c0_87 = arith.constant 0 : index
    %c0_88 = arith.constant 0 : index
    %214 = vector.load %arg7[%c1_86, %c0_87, %c0_88] : memref<2x1x32xf32, #tpu.memory_space<vmem>>, vector<1x1x32xf32>
    %215 = vector.shape_cast %214 : vector<1x1x32xf32> to vector<1x32xf32>
    %cst_89 = arith.constant dense<0.000000e+00> : vector<16xf32>
    %216 = vector.multi_reduction <add>, %211, %cst_89 [1] : vector<16x32xf32> to vector<16xf32>
    %217 = vector.shape_cast %216 : vector<16xf32> to vector<16x1xf32>
    %cst_90 = arith.constant 3.200000e+01 : f32
    %218 = vector.broadcast %cst_90 : f32 to vector<16x1xf32>
    %219 = arith.divf %217, %218 : vector<16x1xf32>
    %220 = vector.broadcast %219 : vector<16x1xf32> to vector<16x32xf32>
    %221 = arith.subf %211, %220 : vector<16x32xf32>
    %222 = arith.mulf %221, %221 : vector<16x32xf32>
    %cst_91 = arith.constant dense<0.000000e+00> : vector<16xf32>
    %223 = vector.multi_reduction <add>, %222, %cst_91 [1] : vector<16x32xf32> to vector<16xf32>
    %224 = vector.shape_cast %223 : vector<16xf32> to vector<16x1xf32>
    %cst_92 = arith.constant 3.200000e+01 : f32
    %225 = vector.broadcast %cst_92 : f32 to vector<16x1xf32>
    %226 = arith.divf %224, %225 : vector<16x1xf32>
    %227 = vector.broadcast %219 : vector<16x1xf32> to vector<16x32xf32>
    %228 = arith.subf %211, %227 : vector<16x32xf32>
    %cst_93 = arith.constant 9.99999974E-6 : f32
    %229 = vector.broadcast %cst_93 : f32 to vector<16x1xf32>
    %230 = arith.addf %226, %229 : vector<16x1xf32>
    %231 = math.rsqrt %230 : vector<16x1xf32>
    %232 = vector.broadcast %231 : vector<16x1xf32> to vector<16x32xf32>
    %233 = arith.mulf %228, %232 : vector<16x32xf32>
    %234 = vector.broadcast %213 : vector<1x32xf32> to vector<16x32xf32>
    %235 = arith.mulf %233, %234 : vector<16x32xf32>
    %236 = vector.broadcast %215 : vector<1x32xf32> to vector<16x32xf32>
    %237 = arith.addf %235, %236 : vector<16x32xf32>
    %c1_94 = arith.constant 1 : index
    %c0_95 = arith.constant 0 : index
    %c0_96 = arith.constant 0 : index
    %238 = vector.load %arg8[%c1_94, %c0_95, %c0_96] : memref<2x32x96xf32, #tpu.memory_space<vmem>>, vector<1x32x96xf32>
    %239 = vector.shape_cast %238 : vector<1x32x96xf32> to vector<32x96xf32>
    %240 = arith.truncf %237 : vector<16x32xf32> to vector<16x32xbf16>
    %241 = arith.truncf %239 : vector<32x96xf32> to vector<32x96xbf16>
    %cst_97 = arith.constant dense<0.000000e+00> : vector<16x96xf32>
    %242 = tpu.matmul %240, %241, %cst_97 {dimension_numbers = #tpu.dot_dimension_numbers<[1], [0], [0], [1], [0, 0, 1, 1], [], []>} : vector<16x32xbf16>, vector<32x96xbf16>, vector<16x96xf32> -> vector<16x96xf32>
    %c1_98 = arith.constant 1 : index
    %c0_99 = arith.constant 0 : index
    %c0_100 = arith.constant 0 : index
    %243 = vector.load %arg9[%c1_98, %c0_99, %c0_100] : memref<2x1x96xf32, #tpu.memory_space<vmem>>, vector<1x1x96xf32>
    %244 = vector.shape_cast %243 : vector<1x1x96xf32> to vector<1x96xf32>
    %245 = vector.broadcast %244 : vector<1x96xf32> to vector<16x96xf32>
    %246 = arith.addf %242, %245 : vector<16x96xf32>
    %247 = vector.extract_strided_slice %246 {offsets = [0, 0], sizes = [16, 32], strides = [1, 1]} : vector<16x96xf32> to vector<16x32xf32>
    %248 = vector.extract_strided_slice %246 {offsets = [0, 32], sizes = [16, 32], strides = [1, 1]} : vector<16x96xf32> to vector<16x32xf32>
    %249 = vector.extract_strided_slice %246 {offsets = [0, 64], sizes = [16, 32], strides = [1, 1]} : vector<16x96xf32> to vector<16x32xf32>
    %250 = arith.mulf %247, %0 : vector<16x32xf32>
    %251 = arith.truncf %247 : vector<16x32xf32> to vector<16x32xbf16>
    %cst_101 = arith.constant dense<0.000000e+00> : vector<16x32xf32>
    %252 = tpu.matmul %251, %3, %cst_101 {dimension_numbers = #tpu.dot_dimension_numbers<[1], [0], [0], [1], [0, 0, 1, 1], [], []>} : vector<16x32xbf16>, vector<32x32xbf16>, vector<16x32xf32> -> vector<16x32xf32>
    %253 = arith.mulf %252, %1 : vector<16x32xf32>
    %254 = arith.addf %250, %253 : vector<16x32xf32>
    %255 = arith.mulf %248, %0 : vector<16x32xf32>
    %256 = arith.truncf %248 : vector<16x32xf32> to vector<16x32xbf16>
    %cst_102 = arith.constant dense<0.000000e+00> : vector<16x32xf32>
    %257 = tpu.matmul %256, %3, %cst_102 {dimension_numbers = #tpu.dot_dimension_numbers<[1], [0], [0], [1], [0, 0, 1, 1], [], []>} : vector<16x32xbf16>, vector<32x32xbf16>, vector<16x32xf32> -> vector<16x32xf32>
    %258 = arith.mulf %257, %1 : vector<16x32xf32>
    %259 = arith.addf %255, %258 : vector<16x32xf32>
    %260 = vector.extract_strided_slice %254 {offsets = [0, 0], sizes = [16, 8], strides = [1, 1]} : vector<16x32xf32> to vector<16x8xf32>
    %261 = vector.extract_strided_slice %254 {offsets = [0, 8], sizes = [16, 8], strides = [1, 1]} : vector<16x32xf32> to vector<16x8xf32>
    %262 = vector.extract_strided_slice %254 {offsets = [0, 16], sizes = [16, 8], strides = [1, 1]} : vector<16x32xf32> to vector<16x8xf32>
    %263 = vector.extract_strided_slice %254 {offsets = [0, 24], sizes = [16, 8], strides = [1, 1]} : vector<16x32xf32> to vector<16x8xf32>
    %264 = vector.shape_cast %260 : vector<16x8xf32> to vector<1x16x8xf32>
    %265 = vector.shape_cast %261 : vector<16x8xf32> to vector<1x16x8xf32>
    %266 = vector.shape_cast %262 : vector<16x8xf32> to vector<1x16x8xf32>
    %267 = vector.shape_cast %263 : vector<16x8xf32> to vector<1x16x8xf32>
    %268 = tpu.concatenate %264, %265, %266, %267 in 0 : vector<1x16x8xf32>, vector<1x16x8xf32>, vector<1x16x8xf32>, vector<1x16x8xf32> -> vector<4x16x8xf32>
    %269 = arith.truncf %268 : vector<4x16x8xf32> to vector<4x16x8xbf16>
    %270 = vector.extract_strided_slice %259 {offsets = [0, 0], sizes = [16, 8], strides = [1, 1]} : vector<16x32xf32> to vector<16x8xf32>
    %271 = vector.extract_strided_slice %259 {offsets = [0, 8], sizes = [16, 8], strides = [1, 1]} : vector<16x32xf32> to vector<16x8xf32>
    %272 = vector.extract_strided_slice %259 {offsets = [0, 16], sizes = [16, 8], strides = [1, 1]} : vector<16x32xf32> to vector<16x8xf32>
    %273 = vector.extract_strided_slice %259 {offsets = [0, 24], sizes = [16, 8], strides = [1, 1]} : vector<16x32xf32> to vector<16x8xf32>
    %274 = vector.shape_cast %270 : vector<16x8xf32> to vector<1x16x8xf32>
    %275 = vector.shape_cast %271 : vector<16x8xf32> to vector<1x16x8xf32>
    %276 = vector.shape_cast %272 : vector<16x8xf32> to vector<1x16x8xf32>
    %277 = vector.shape_cast %273 : vector<16x8xf32> to vector<1x16x8xf32>
    %278 = tpu.concatenate %274, %275, %276, %277 in 0 : vector<1x16x8xf32>, vector<1x16x8xf32>, vector<1x16x8xf32>, vector<1x16x8xf32> -> vector<4x16x8xf32>
    %279 = arith.truncf %278 : vector<4x16x8xf32> to vector<4x16x8xbf16>
    %280 = vector.extract_strided_slice %249 {offsets = [0, 0], sizes = [16, 8], strides = [1, 1]} : vector<16x32xf32> to vector<16x8xf32>
    %281 = vector.extract_strided_slice %249 {offsets = [0, 8], sizes = [16, 8], strides = [1, 1]} : vector<16x32xf32> to vector<16x8xf32>
    %282 = vector.extract_strided_slice %249 {offsets = [0, 16], sizes = [16, 8], strides = [1, 1]} : vector<16x32xf32> to vector<16x8xf32>
    %283 = vector.extract_strided_slice %249 {offsets = [0, 24], sizes = [16, 8], strides = [1, 1]} : vector<16x32xf32> to vector<16x8xf32>
    %284 = vector.shape_cast %280 : vector<16x8xf32> to vector<1x16x8xf32>
    %285 = vector.shape_cast %281 : vector<16x8xf32> to vector<1x16x8xf32>
    %286 = vector.shape_cast %282 : vector<16x8xf32> to vector<1x16x8xf32>
    %287 = vector.shape_cast %283 : vector<16x8xf32> to vector<1x16x8xf32>
    %288 = tpu.concatenate %284, %285, %286, %287 in 0 : vector<1x16x8xf32>, vector<1x16x8xf32>, vector<1x16x8xf32>, vector<1x16x8xf32> -> vector<4x16x8xf32>
    %289 = arith.truncf %288 : vector<4x16x8xf32> to vector<4x16x8xbf16>
    "tpu.trace_start"() <{level = 10 : i32, message = "hqd,hkd->hqk"}> : () -> ()
    %cst_103 = arith.constant dense<0.000000e+00> : vector<4x16x16xf32>
    %290 = tpu.matmul %269, %279, %cst_103 {dimension_numbers = #tpu.dot_dimension_numbers<[2], [2], [1], [1], [0, 0, 0, 1, 1, 1], [0], [0]>} : vector<4x16x8xbf16>, vector<4x16x8xbf16>, vector<4x16x16xf32> -> vector<4x16x16xf32>
    "tpu.trace_stop"() : () -> ()
    %291 = vector.broadcast %12 : vector<1x16x16xf32> to vector<4x16x16xf32>
    %292 = arith.addf %290, %291 : vector<4x16x16xf32>
    %cst_104 = arith.constant dense<0xFF800000> : vector<4x16xf32>
    %293 = vector.multi_reduction <maximumf>, %292, %cst_104 [2] : vector<4x16x16xf32> to vector<4x16xf32>
    %294 = vector.shape_cast %293 : vector<4x16xf32> to vector<4x16x1xf32>
    %295 = vector.broadcast %294 : vector<4x16x1xf32> to vector<4x16x16xf32>
    %296 = arith.subf %292, %295 : vector<4x16x16xf32>
    %297 = math.exp %296 : vector<4x16x16xf32>
    %cst_105 = arith.constant dense<0.000000e+00> : vector<4x16xf32>
    %298 = vector.multi_reduction <add>, %297, %cst_105 [2] : vector<4x16x16xf32> to vector<4x16xf32>
    %299 = vector.shape_cast %298 : vector<4x16xf32> to vector<4x16x1xf32>
    %300 = tpu.reciprocal %299 {approx = true} : vector<4x16x1xf32> -> vector<4x16x1xf32>
    %301 = vector.broadcast %300 : vector<4x16x1xf32> to vector<4x16x16xf32>
    %302 = arith.mulf %297, %301 : vector<4x16x16xf32>
    %303 = arith.truncf %302 : vector<4x16x16xf32> to vector<4x16x16xbf16>
    "tpu.trace_start"() <{level = 10 : i32, message = "hqk,hkd->hqd"}> : () -> ()
    %cst_106 = arith.constant dense<0.000000e+00> : vector<4x16x8xf32>
    %304 = tpu.matmul %303, %289, %cst_106 {dimension_numbers = #tpu.dot_dimension_numbers<[2], [1], [1], [2], [0, 0, 0, 1, 1, 2], [0], [0]>} : vector<4x16x16xbf16>, vector<4x16x8xbf16>, vector<4x16x8xf32> -> vector<4x16x8xf32>
    "tpu.trace_stop"() : () -> ()
    %305 = vector.extract_strided_slice %304 {offsets = [0, 0, 0], sizes = [1, 16, 8], strides = [1, 1, 1]} : vector<4x16x8xf32> to vector<1x16x8xf32>
    %306 = vector.shape_cast %305 : vector<1x16x8xf32> to vector<16x8xf32>
    %307 = vector.extract_strided_slice %304 {offsets = [1, 0, 0], sizes = [1, 16, 8], strides = [1, 1, 1]} : vector<4x16x8xf32> to vector<1x16x8xf32>
    %308 = vector.shape_cast %307 : vector<1x16x8xf32> to vector<16x8xf32>
    %309 = vector.extract_strided_slice %304 {offsets = [2, 0, 0], sizes = [1, 16, 8], strides = [1, 1, 1]} : vector<4x16x8xf32> to vector<1x16x8xf32>
    %310 = vector.shape_cast %309 : vector<1x16x8xf32> to vector<16x8xf32>
    %311 = vector.extract_strided_slice %304 {offsets = [3, 0, 0], sizes = [1, 16, 8], strides = [1, 1, 1]} : vector<4x16x8xf32> to vector<1x16x8xf32>
    %312 = vector.shape_cast %311 : vector<1x16x8xf32> to vector<16x8xf32>
    %313 = tpu.concatenate %306, %308, %310, %312 in 1 : vector<16x8xf32>, vector<16x8xf32>, vector<16x8xf32>, vector<16x8xf32> -> vector<16x32xf32>
    %c1_107 = arith.constant 1 : index
    %c0_108 = arith.constant 0 : index
    %c0_109 = arith.constant 0 : index
    %314 = vector.load %arg10[%c1_107, %c0_108, %c0_109] : memref<2x32x32xf32, #tpu.memory_space<vmem>>, vector<1x32x32xf32>
    %315 = vector.shape_cast %314 : vector<1x32x32xf32> to vector<32x32xf32>
    %316 = arith.truncf %313 : vector<16x32xf32> to vector<16x32xbf16>
    %317 = arith.truncf %315 : vector<32x32xf32> to vector<32x32xbf16>
    %cst_110 = arith.constant dense<0.000000e+00> : vector<16x32xf32>
    %318 = tpu.matmul %316, %317, %cst_110 {dimension_numbers = #tpu.dot_dimension_numbers<[1], [0], [0], [1], [0, 0, 1, 1], [], []>} : vector<16x32xbf16>, vector<32x32xbf16>, vector<16x32xf32> -> vector<16x32xf32>
    %319 = arith.addf %211, %318 : vector<16x32xf32>
    %c1_111 = arith.constant 1 : index
    %c0_112 = arith.constant 0 : index
    %c0_113 = arith.constant 0 : index
    %320 = vector.load %arg11[%c1_111, %c0_112, %c0_113] : memref<2x1x32xf32, #tpu.memory_space<vmem>>, vector<1x1x32xf32>
    %321 = vector.shape_cast %320 : vector<1x1x32xf32> to vector<1x32xf32>
    %322 = vector.broadcast %321 : vector<1x32xf32> to vector<16x32xf32>
    %323 = arith.addf %319, %322 : vector<16x32xf32>
    %c1_114 = arith.constant 1 : index
    %c0_115 = arith.constant 0 : index
    %c0_116 = arith.constant 0 : index
    %324 = vector.load %arg12[%c1_114, %c0_115, %c0_116] : memref<2x1x32xf32, #tpu.memory_space<vmem>>, vector<1x1x32xf32>
    %325 = vector.shape_cast %324 : vector<1x1x32xf32> to vector<1x32xf32>
    %c1_117 = arith.constant 1 : index
    %c0_118 = arith.constant 0 : index
    %c0_119 = arith.constant 0 : index
    %326 = vector.load %arg13[%c1_117, %c0_118, %c0_119] : memref<2x1x32xf32, #tpu.memory_space<vmem>>, vector<1x1x32xf32>
    %327 = vector.shape_cast %326 : vector<1x1x32xf32> to vector<1x32xf32>
    %cst_120 = arith.constant dense<0.000000e+00> : vector<16xf32>
    %328 = vector.multi_reduction <add>, %323, %cst_120 [1] : vector<16x32xf32> to vector<16xf32>
    %329 = vector.shape_cast %328 : vector<16xf32> to vector<16x1xf32>
    %cst_121 = arith.constant 3.200000e+01 : f32
    %330 = vector.broadcast %cst_121 : f32 to vector<16x1xf32>
    %331 = arith.divf %329, %330 : vector<16x1xf32>
    %332 = vector.broadcast %331 : vector<16x1xf32> to vector<16x32xf32>
    %333 = arith.subf %323, %332 : vector<16x32xf32>
    %334 = arith.mulf %333, %333 : vector<16x32xf32>
    %cst_122 = arith.constant dense<0.000000e+00> : vector<16xf32>
    %335 = vector.multi_reduction <add>, %334, %cst_122 [1] : vector<16x32xf32> to vector<16xf32>
    %336 = vector.shape_cast %335 : vector<16xf32> to vector<16x1xf32>
    %cst_123 = arith.constant 3.200000e+01 : f32
    %337 = vector.broadcast %cst_123 : f32 to vector<16x1xf32>
    %338 = arith.divf %336, %337 : vector<16x1xf32>
    %339 = vector.broadcast %331 : vector<16x1xf32> to vector<16x32xf32>
    %340 = arith.subf %323, %339 : vector<16x32xf32>
    %cst_124 = arith.constant 9.99999974E-6 : f32
    %341 = vector.broadcast %cst_124 : f32 to vector<16x1xf32>
    %342 = arith.addf %338, %341 : vector<16x1xf32>
    %343 = math.rsqrt %342 : vector<16x1xf32>
    %344 = vector.broadcast %343 : vector<16x1xf32> to vector<16x32xf32>
    %345 = arith.mulf %340, %344 : vector<16x32xf32>
    %346 = vector.broadcast %325 : vector<1x32xf32> to vector<16x32xf32>
    %347 = arith.mulf %345, %346 : vector<16x32xf32>
    %348 = vector.broadcast %327 : vector<1x32xf32> to vector<16x32xf32>
    %349 = arith.addf %347, %348 : vector<16x32xf32>
    %c1_125 = arith.constant 1 : index
    %c0_126 = arith.constant 0 : index
    %c0_127 = arith.constant 0 : index
    %350 = vector.load %arg14[%c1_125, %c0_126, %c0_127] : memref<2x32x128xf32, #tpu.memory_space<vmem>>, vector<1x32x128xf32>
    %351 = vector.shape_cast %350 : vector<1x32x128xf32> to vector<32x128xf32>
    %352 = arith.truncf %349 : vector<16x32xf32> to vector<16x32xbf16>
    %353 = arith.truncf %351 : vector<32x128xf32> to vector<32x128xbf16>
    %cst_128 = arith.constant dense<0.000000e+00> : vector<16x128xf32>
    %354 = tpu.matmul %352, %353, %cst_128 {dimension_numbers = #tpu.dot_dimension_numbers<[1], [0], [0], [1], [0, 0, 1, 1], [], []>} : vector<16x32xbf16>, vector<32x128xbf16>, vector<16x128xf32> -> vector<16x128xf32>
    %c1_129 = arith.constant 1 : index
    %c0_130 = arith.constant 0 : index
    %c0_131 = arith.constant 0 : index
    %355 = vector.load %arg15[%c1_129, %c0_130, %c0_131] : memref<2x1x128xf32, #tpu.memory_space<vmem>>, vector<1x1x128xf32>
    %356 = vector.shape_cast %355 : vector<1x1x128xf32> to vector<1x128xf32>
    %357 = vector.broadcast %356 : vector<1x128xf32> to vector<16x128xf32>
    %358 = arith.addf %354, %357 : vector<16x128xf32>
    %cst_132 = arith.constant 5.000000e-01 : f32
    %359 = vector.broadcast %cst_132 : f32 to vector<16x128xf32>
    %360 = arith.mulf %358, %359 : vector<16x128xf32>
    %cst_133 = arith.constant 0.707106769 : f32
    %361 = vector.broadcast %cst_133 : f32 to vector<16x128xf32>
    %362 = arith.mulf %358, %361 : vector<16x128xf32>
    %cst_134 = arith.constant 0.000000e+00 : f32
    %363 = vector.broadcast %cst_134 : f32 to vector<16x128xf32>
    %364 = arith.cmpf oge, %362, %363 : vector<16x128xf32>
    %cst_135 = arith.constant 1.000000e+00 : f32
    %cst_136 = arith.constant -1.000000e+00 : f32
    %365 = vector.broadcast %cst_135 : f32 to vector<16x128xf32>
    %366 = vector.broadcast %cst_136 : f32 to vector<16x128xf32>
    %367 = arith.select %364, %365, %366 : vector<16x128xi1>, vector<16x128xf32>
    %368 = math.absf %362 : vector<16x128xf32>
    %cst_137 = arith.constant 0.327591091 : f32
    %369 = vector.broadcast %cst_137 : f32 to vector<16x128xf32>
    %370 = arith.mulf %369, %368 : vector<16x128xf32>
    %cst_138 = arith.constant 1.000000e+00 : f32
    %371 = vector.broadcast %cst_138 : f32 to vector<16x128xf32>
    %372 = arith.addf %371, %370 : vector<16x128xf32>
    %cst_139 = arith.constant 1.000000e+00 : f32
    %373 = vector.broadcast %cst_139 : f32 to vector<16x128xf32>
    %374 = arith.divf %373, %372 : vector<16x128xf32>
    %cst_140 = arith.constant 1.06140542 : f32
    %375 = vector.broadcast %cst_140 : f32 to vector<16x128xf32>
    %376 = arith.mulf %375, %374 : vector<16x128xf32>
    %cst_141 = arith.constant -1.45315206 : f32
    %377 = vector.broadcast %cst_141 : f32 to vector<16x128xf32>
    %378 = arith.addf %376, %377 : vector<16x128xf32>
    %379 = arith.mulf %378, %374 : vector<16x128xf32>
    %cst_142 = arith.constant 1.42141378 : f32
    %380 = vector.broadcast %cst_142 : f32 to vector<16x128xf32>
    %381 = arith.addf %379, %380 : vector<16x128xf32>
    %382 = arith.mulf %381, %374 : vector<16x128xf32>
    %cst_143 = arith.constant -0.284496725 : f32
    %383 = vector.broadcast %cst_143 : f32 to vector<16x128xf32>
    %384 = arith.addf %382, %383 : vector<16x128xf32>
    %385 = arith.mulf %384, %374 : vector<16x128xf32>
    %cst_144 = arith.constant 0.254829586 : f32
    %386 = vector.broadcast %cst_144 : f32 to vector<16x128xf32>
    %387 = arith.addf %385, %386 : vector<16x128xf32>
    %388 = arith.mulf %387, %374 : vector<16x128xf32>
    %389 = arith.mulf %368, %368 : vector<16x128xf32>
    %cst_145 = arith.constant 0.000000e+00 : f32
    %390 = vector.broadcast %cst_145 : f32 to vector<16x128xf32>
    %391 = arith.subf %390, %389 : vector<16x128xf32>
    %392 = math.exp %391 : vector<16x128xf32>
    %393 = arith.mulf %388, %392 : vector<16x128xf32>
    %cst_146 = arith.constant 1.000000e+00 : f32
    %394 = vector.broadcast %cst_146 : f32 to vector<16x128xf32>
    %395 = arith.subf %394, %393 : vector<16x128xf32>
    %396 = arith.mulf %367, %395 : vector<16x128xf32>
    %cst_147 = arith.constant 1.000000e+00 : f32
    %397 = vector.broadcast %cst_147 : f32 to vector<16x128xf32>
    %398 = arith.addf %397, %396 : vector<16x128xf32>
    %399 = arith.mulf %360, %398 : vector<16x128xf32>
    %c1_148 = arith.constant 1 : index
    %c0_149 = arith.constant 0 : index
    %c0_150 = arith.constant 0 : index
    %400 = vector.load %arg16[%c1_148, %c0_149, %c0_150] : memref<2x128x32xf32, #tpu.memory_space<vmem>>, vector<1x128x32xf32>
    %401 = vector.shape_cast %400 : vector<1x128x32xf32> to vector<128x32xf32>
    %402 = arith.truncf %399 : vector<16x128xf32> to vector<16x128xbf16>
    %403 = arith.truncf %401 : vector<128x32xf32> to vector<128x32xbf16>
    %cst_151 = arith.constant dense<0.000000e+00> : vector<16x32xf32>
    %404 = tpu.matmul %402, %403, %cst_151 {dimension_numbers = #tpu.dot_dimension_numbers<[1], [0], [0], [1], [0, 0, 1, 1], [], []>} : vector<16x128xbf16>, vector<128x32xbf16>, vector<16x32xf32> -> vector<16x32xf32>
    %405 = arith.addf %323, %404 : vector<16x32xf32>
    %c1_152 = arith.constant 1 : index
    %c0_153 = arith.constant 0 : index
    %c0_154 = arith.constant 0 : index
    %406 = vector.load %arg17[%c1_152, %c0_153, %c0_154] : memref<2x1x32xf32, #tpu.memory_space<vmem>>, vector<1x1x32xf32>
    %407 = vector.shape_cast %406 : vector<1x1x32xf32> to vector<1x32xf32>
    %408 = vector.broadcast %407 : vector<1x32xf32> to vector<16x32xf32>
    %409 = arith.addf %405, %408 : vector<16x32xf32>
    %c0_155 = arith.constant 0 : index
    %c0_156 = arith.constant 0 : index
    %410 = vector.load %arg18[%c0_155, %c0_156] : memref<1x32xf32, #tpu.memory_space<vmem>>, vector<1x32xf32>
    %c0_157 = arith.constant 0 : index
    %c0_158 = arith.constant 0 : index
    %411 = vector.load %arg19[%c0_157, %c0_158] : memref<1x32xf32, #tpu.memory_space<vmem>>, vector<1x32xf32>
    %cst_159 = arith.constant dense<0.000000e+00> : vector<16xf32>
    %412 = vector.multi_reduction <add>, %409, %cst_159 [1] : vector<16x32xf32> to vector<16xf32>
    %413 = vector.shape_cast %412 : vector<16xf32> to vector<16x1xf32>
    %cst_160 = arith.constant 3.200000e+01 : f32
    %414 = vector.broadcast %cst_160 : f32 to vector<16x1xf32>
    %415 = arith.divf %413, %414 : vector<16x1xf32>
    %416 = vector.broadcast %415 : vector<16x1xf32> to vector<16x32xf32>
    %417 = arith.subf %409, %416 : vector<16x32xf32>
    %418 = arith.mulf %417, %417 : vector<16x32xf32>
    %cst_161 = arith.constant dense<0.000000e+00> : vector<16xf32>
    %419 = vector.multi_reduction <add>, %418, %cst_161 [1] : vector<16x32xf32> to vector<16xf32>
    %420 = vector.shape_cast %419 : vector<16xf32> to vector<16x1xf32>
    %cst_162 = arith.constant 3.200000e+01 : f32
    %421 = vector.broadcast %cst_162 : f32 to vector<16x1xf32>
    %422 = arith.divf %420, %421 : vector<16x1xf32>
    %423 = vector.broadcast %415 : vector<16x1xf32> to vector<16x32xf32>
    %424 = arith.subf %409, %423 : vector<16x32xf32>
    %cst_163 = arith.constant 9.99999974E-6 : f32
    %425 = vector.broadcast %cst_163 : f32 to vector<16x1xf32>
    %426 = arith.addf %422, %425 : vector<16x1xf32>
    %427 = math.rsqrt %426 : vector<16x1xf32>
    %428 = vector.broadcast %427 : vector<16x1xf32> to vector<16x32xf32>
    %429 = arith.mulf %424, %428 : vector<16x32xf32>
    %430 = vector.broadcast %410 : vector<1x32xf32> to vector<16x32xf32>
    %431 = arith.mulf %429, %430 : vector<16x32xf32>
    %432 = vector.broadcast %411 : vector<1x32xf32> to vector<16x32xf32>
    %433 = arith.addf %431, %432 : vector<16x32xf32>
    %c0_164 = arith.constant 0 : index
    %c0_165 = arith.constant 0 : index
    %434 = vector.load %arg20[%c0_164, %c0_165] : memref<16x32xf32, #tpu.memory_space<vmem>>, vector<16x32xf32>
    tpu.vector_store %arg20[%c0_164, %c0_165], %433 {strides = array<i32>} : memref<16x32xf32, #tpu.memory_space<vmem>>, vector<16x32xf32>,
    return
  }
}

</mosaic_0001>

<bundles_post_ra>
// kernel: esm_backbone_forward.1
= control target key start
LH: loop header
LB: loop body
LE: loop exit
PB: predicated region body
PF: predicated region fallthrough
CT: control target
= control target key end

     0   :  { %vm103_vm0 = vcmask 261120   ;;  %v2979_v14 = vmov 0.0   ;;  %vm2980_vm1 = vmmov 0   ;;  %s2983_s24 = smov 112   ;;  %s2986_s25 = smov 104   ;;  %vm399_vm2 = vcmask 64512   ;;  %s3801_s0 = inlined_call_operand.vmem [shape: f32[16,32], index: 0, kind: input, shape index: {}]   ;;  %s3802_s8 = inlined_call_operand.vmem [shape: f32[2,32,96], index: 8, kind: input, shape index: {}]   ;;  %s3803_s1 = inlined_call_operand.vmem [shape: f32[16,32], index: 1, kind: input, shape index: {}]   ;;  %s3804_s6 = inlined_call_operand.vmem [shape: f32[2,1,32], index: 6, kind: input, shape index: {}]   ;;  %s3805_s7 = inlined_call_operand.vmem [shape: f32[2,1,32], index: 7, kind: input, shape index: {}]   ;;  %s3806_s3 = inlined_call_operand.vmem [shape: f32[32,32], index: 3, kind: input, shape index: {}]   ;;  %s3807_s9 = inlined_call_operand.vmem [shape: f32[2,1,96], index: 9, kind: input, shape index: {}]   ;;  %s3808_s2 = inlined_call_operand.vmem [shape: f32[16,32], index: 2, kind: input, shape index: {}]   ;;  %s3809_s4 = inlined_call_operand.vmem [shape: f32[16,1], index: 4, kind: input, shape index: {}]   ;;  %s3810_s5 = inlined_call_operand.vmem [shape: f32[1,16], index: 5, kind: input, shape index: {}]   ;;  %s3811_s10 = inlined_call_operand.vmem [shape: f32[2,32,32], index: 10, kind: input, shape index: {}]   ;;  %s3812_s11 = inlined_call_operand.vmem [shape: f32[2,1,32], index: 11, kind: input, shape index: {}]   ;;  %s3813_s14 = inlined_call_operand.vmem [shape: f32[2,32,128], index: 14, kind: input, shape index: {}]   ;;  %s3814_s12 = inlined_call_operand.vmem [shape: f32[2,1,32], index: 12, kind: input, shape index: {}]   ;;  %s3815_s13 = inlined_call_operand.vmem [shape: f32[2,1,32], index: 13, kind: input, shape index: {}]   ;;  %s3816_s16 = inlined_call_operand.vmem [shape: f32[2,128,32], index: 16, kind: input, shape index: {}]   ;;  %s3817_s15 = inlined_call_operand.vmem [shape: f32[2,1,128], index: 15, kind: input, shape index: {}]   ;;  %s3818_s17 = inlined_call_operand.vmem [shape: f32[2,1,32], index: 17, kind: input, shape index: {}]   ;;  %s3819_s18 = inlined_call_operand.vmem [shape: f32[1,32], index: 18, kind: input, shape index: {}]   ;;  %s3820_s19 = inlined_call_operand.vmem [shape: f32[1,32], index: 19, kind: input, shape index: {}]   ;;  %s3821_s20 = inlined_call_operand.vmem [shape: f32[16,32], index: 20, kind: output, shape index: {}]  }
   0x1   :  { %3830 = sst [smem:[#allocation2_spill]] %s3801_s0  ;;  %2523 = vmatprep.subr.bf16.mxu1 %v2979_v14  ;;  %2527 = vmatprep.mubr.msk.bf16.mxu1 %vm2980_vm1, %v2979_v14  ;;  %v70_v40 = vld [vmem:[%s3806_s3] sm:$0xff]  ;;  %v71_v41 = vld [vmem:[%s3806_s3 + $0x8] sm:$0xff]  ;;  %v72_v43 = vld [vmem:[%s3806_s3 + $0x10] sm:$0xff]  ;;  %vm597_vm5 = vcmask 130048   ;;  %s3829_s21 = smov 8  }
   0x2   :  { %3831 = sst [smem:[#allocation3_spill]] %s3802_s8  ;;  %s3835_s23 = sld [smem:[#allocation2_spill]]  ;;  %2553 = vmatprep.subr.bf16.mxu0 %v2979_v14  ;;  %2555 = vmatprep.mubr.msk.bf16.mxu0 %vm2980_vm1, %v2979_v14  ;;  %v3165_v42 = vpack.c.bf16 %v71_v41, %v70_v40  ;;  %v73_v44 = vld [vmem:[%s3806_s3 + $0x18] sm:$0xff]  ;;  %v2365_v46 = vld [vmem:[%s3807_s9] ss:$0 sm:$0xff]  ;;  %v69_v58 = vld [vmem:[%s3808_s2 + $0x8] sm:$0xff] }
   0x3   :  { %3832 = sst [smem:[#allocation4_spill]] %s3803_s1  ;;  %s3836_s26 = sld [smem:[#allocation3_spill]]  ;;  %v3175_v45 = vpack.c.bf16 %v73_v44, %v72_v43  ;;  %v68_v56 = vld [vmem:[%s3808_s2] sm:$0xff]  ;;  %v77_v41 = vld [vmem:[%s3809_s4 + $0x8] sm:$0xff]  ;;  %vm909_vm6 = vcmask 195584  }
   0x4   :  { %3833 = sst [smem:[#allocation5_spill]] %s3804_s6  ;;  %s3837_s22 = sld [smem:[#allocation4_spill]]  ;;  %v76_v40 = vld [vmem:[%s3809_s4] sm:$0xff] }
   0x5   :  { %3834 = sst [smem:[#allocation6_spill]] %s3805_s7  ;;  %s3838_s27 = sld [smem:[#allocation5_spill]] }
   0x6   :  { %s3839_s29 = sld [smem:[#allocation6_spill]]  ;;  %s2982_s3 = smov 96  }
   0x7   :  { %s2984_s1 = smov 120   ;;  %s3828_s8 = smov 16  }
   0x8   :  { %v3101_v0 = vld [vmem:[%s3835_s23] sm:$0xff]  ;;  %v3106_v1 = vld [vmem:[%s3835_s23 + $0x8] sm:$0xff]  ;;  %s2981_s23 = smov 32   ;;  %s3827_s6 = smov 24  }
   0x9   :  { %v104_v2 = vsel %vm103_vm0, %v3101_v0, 0.0  ;;  %v107_v3 = vsel %vm103_vm0, %v3106_v1, 0.0  ;;  %v147_v15 = vld [vmem:[%s3836_s26] sm:$0xff]  ;;  %v148_v16 = vld [vmem:[%s3836_s26 + $0x8] sm:$0xff]  ;;  %v149_v17 = vld [vmem:[%s3836_s26 + $0x10] sm:$0xff] }
   0xa   :  { %105 = vadd.xlane.f32.xlu0 %v104_v2  ;;  %v152_v18 = vpack.c.bf16 %v148_v16, %v147_v15  ;;  %v150_v19 = vld [vmem:[%s3836_s26 + $0x18] sm:$0xff]  ;;  %v3139_v21 = vld [vmem:[%s3837_s22] sm:$0xff]  ;;  %v3146_v22 = vld [vmem:[%s3837_s22 + $0x8] sm:$0xff] }
   0xb   :  { %v153_v20 = vpack.c.bf16 %v150_v19, %v149_v17  ;;  %v2363_v31 = vld [vmem:[%s3838_s27] ss:$0 sm:$0xff] }
   0xc   :  { %2524 = vmatpush3.bf16.msra.mxu1 %v152_v18  ;;  %v2364_v35 = vld [vmem:[%s3839_s29] ss:$0 sm:$0xff] }
   0xd   :  { %2525 = vmatprep.subr.bf16.mxu1 %v2979_v14 }
   0xe   :  { %108 = vadd.xlane.f32.xlu0 %v107_v3 }
  0x10   :  { %2526 = vmatpush3.bf16.msra.mxu1 %v153_v20 }
  0x11   :  { %2531 = vmatprep.subr.bf16.mxu1 %v2979_v14 }
  0x97   :  { %v106_v4 = vpop.xlane.xlu0 %105 }
  0x98   :  { %v111_v5 = vmul.f32 0.03125, %v106_v4 }
  0x9a   :  { %v113_v6 = vsub.f32 %v3101_v0, %v111_v5 }
  0x9b   :  { %v109_v7 = vpop.xlane.xlu0 %108 }
  0x9c   :  { %v112_v8 = vmul.f32 0.03125, %v109_v7  ;;  %v115_v9 = vmul.f32 %v113_v6, %v113_v6 }
  0x9e   :  { %v114_v10 = vsub.f32 %v3106_v1, %v112_v8  ;;  %v117_v11 = vsel %vm103_vm0, %v115_v9, 0.0 }
  0x9f   :  { %118 = vadd.xlane.f32.xlu1 %v117_v11 }
  0xa0   :  { %v116_v12 = vmul.f32 %v114_v10, %v114_v10 }
  0xa2   :  { %v120_v13 = vsel %vm103_vm0, %v116_v12, 0.0 }
  0xa3   :  { %121 = vadd.xlane.f32.xlu1 %v120_v13 }
  0xb4   :  { %258 = vrot.lane.b32.xlu1 %v3139_v21, %s2981_s23 }
  0xb8   :  { %260 = vrot.lane.b32.xlu1 %v3146_v22, %s2981_s23 }
 0x12c   :  { %v119_v23 = vpop.xlane.xlu1 %118 }
 0x12d   :  { %v123_v24 = vmul.f32 0.03125, %v119_v23 }
 0x12f   :  { %v125_v25 = vadd.f32 1e-05, %v123_v24 }
 0x130   :  { %v122_v26 = vpop.xlane.xlu1 %121 }
 0x131   :  { %2875 = vrsqrt.f32 %v125_v25  ;;  %v124_v27 = vmul.f32 0.03125, %v122_v26  ;;  %v2985_v25 = vmov 0  }
 0x132   :  { %2783 = vset.pattern.permute.xlu1 %v2985_v25  ;;  %2784 = vset.pattern.permute.xlu0 %v2985_v25 }
 0x133   :  { %v126_v28 = vadd.f32 1e-05, %v124_v27 }
 0x134   :  { %v3209_v15 = vpop.permute.xlu1 %258 }
 0x135   :  { %2877 = vrsqrt.f32 %v126_v28 }
 0x138   :  { %v3211_v16 = vpop.permute.xlu1 %260 }
 0x13b   :  { %v2876_v29 = vpop.eup %2875 }
 0x13c   :  { %v129_v30 = vmul.f32 %v2876_v29, %v113_v6 }
 0x13e   :  { %v137_v34 = vmul.f32 %v2363_v31, %v129_v30 }
 0x13f   :  { %v2878_v32 = vpop.eup %2877 }
 0x140   :  { %v130_v33 = vmul.f32 %v2878_v32, %v114_v10  ;;  %v145_v37 = vadd.f32 %v2364_v35, %v137_v34 }
 0x142   :  { %v138_v36 = vmul.f32 %v2363_v31, %v130_v33 }
 0x144   :  { %v146_v38 = vadd.f32 %v2364_v35, %v138_v36 }
 0x146   :  { %v151_v39 = vpack.c.bf16 %v146_v38, %v145_v37 }
 0x148   :  { %2528 = vmatmul.mubr.msk.bf16.vlgmr.msra.gmra.mrb[0].mxu1 %vm103_vm0, %v151_v39 }
 0x149   :  { %2535 = vmatprep.mubr.msk.bf16.mxu1 %vm2980_vm1, %v2979_v14  ;;  %2532 = vmatpush3.bf16.msra.mxu1 %v3165_v42 }
 0x14a   :  { %2533 = vmatprep.subr.bf16.mxu1 %v2979_v14 }
 0x14d   :  { %2534 = vmatpush3.bf16.msra.mxu1 %v3175_v45 }
 0x14e   :  { %2539 = vmatprep.subr.bf16.mxu1 %v2979_v14 }
 0x21b   :  { %v198_v47 = vpop.f32.mrb[0].mxu1 }
 0x21c   :  { %v2529_v48 = vpop.f32.mrb[1].mxu1  ;;  %v199_v50 = vadd.f32 %v2365_v46, %v198_v47 }
 0x21d   :  { %v201_v49 = vpop.f32.mrb[2].mxu1 }
 0x21e   :  { %v202_v51 = vadd.f32 %v2365_v46, %v201_v49  ;;  %v2530_v52 = vpop.f32.mrb[3].mxu1  ;;  %v205_v59 = vmul.f32 %v199_v50, %v3139_v21  ;;  %v264_v18 = vmul.f32 %v3209_v15, %v199_v50 }
 0x220   :  { %v3182_v53 = vpack.c.bf16 %v202_v51, %v199_v50  ;;  %v3184_v54 = vpack.i.bf16 %v202_v51, %v199_v50  ;;  %v206_v2 = vmul.f32 %v202_v51, %v3146_v22  ;;  %v265_v19 = vmul.f32 %v3211_v16, %v202_v51 }
 0x222   :  { %267 = vrot.lane.b32.xlu0 %v3182_v53, %s2982_s3  ;;  %2536 = vmatmul.mubr.msk.bf16.vlgmr.msra.gmra.mrb[4].mxu1 %vm103_vm0, %v3182_v53 }
 0x223   :  { %2540 = vmatpush3.bf16.msra.mxu1 %v3165_v42  ;;  %2543 = vmatprep.mubr.msk.bf16.mxu1 %vm2980_vm1, %v2979_v14 }
 0x224   :  { %2541 = vmatprep.subr.bf16.mxu1 %v2979_v14 }
 0x227   :  { %2542 = vmatpush3.bf16.msra.mxu1 %v3175_v45 }
 0x228   :  { %2547 = vmatprep.subr.bf16.mxu1 %v2979_v14 }
 0x294   :  { %v268_v55 = vpop.permute.xlu0 %267 }
 0x295   :  { %2544 = vmatmul.mubr.msk.bf16.vlgmr.msra.gmra.mrb[8].mxu1 %vm103_vm0, %v268_v55 }
 0x296   :  { %2549 = vmatprep.mubr.msk.bf16.mxu1 %vm2980_vm1, %v2979_v14 }
 0x2f5   :  { %v245_v57 = vpop.f32.mrb[4].mxu1 }
 0x2f6   :  { %v252_v60 = vmul.f32 %v245_v57, %v68_v56  ;;  %v2537_v61 = vpop.f32.mrb[5].mxu1 }
 0x2f7   :  { %v248_v62 = vpop.f32.mrb[6].mxu1 }
 0x2f8   :  { %v254_v63 = vadd.f32 %v252_v60, %v205_v59  ;;  %v253_v3 = vmul.f32 %v248_v62, %v69_v58  ;;  %v2538_v4 = vpop.f32.mrb[7].mxu1 }
 0x2fa   :  { %v255_v5 = vadd.f32 %v253_v3, %v206_v2  ;;  %v2362_v2 = vld [vmem:[%s3810_s5] ss:$0 sm:$0xff]  ;;  %s2988_s5 = smov 64  }
 0x2fc   :  { %v345_v6 = vpack.c.bf16 %v255_v5, %v254_v63  ;;  %v2768_v7 = vpack.i.bf16 %v255_v5, %v254_v63  ;;  %v2987_v5 = vmov -1e+30  }
 0x368   :  { %v306_v8 = vpop.f32.mrb[8].mxu1 }
 0x369   :  { %v313_v9 = vmul.f32 %v306_v8, %v68_v56  ;;  %v2545_v10 = vpop.f32.mrb[9].mxu1 }
 0x36a   :  { %v309_v11 = vpop.f32.mrb[10].mxu1 }
 0x36b   :  { %v314_v12 = vmul.f32 %v309_v11, %v69_v58  ;;  %317 = vrot.lane.b32.xlu1 %v313_v9, %s2981_s23  ;;  %v2546_v13 = vpop.f32.mrb[11].mxu1 }
 0x36d   :  { %319 = vrot.lane.b32.xlu0 %v314_v12, %s2981_s23 }
 0x3dd   :  { %v318_v17 = vpop.permute.xlu1 %317 }
 0x3de   :  { %v323_v21 = vadd.f32 %v318_v17, %v264_v18 }
 0x3df   :  { %v320_v20 = vpop.permute.xlu0 %319 }
 0x3e0   :  { %v324_v22 = vadd.f32 %v320_v20, %v265_v19 }
 0x3e2   :  { %v2758_v23 = vpack.i.bf16 %v324_v22, %v323_v21  ;;  %v369_v24 = vpack.c.bf16 %v324_v22, %v323_v21 }
 0x3e4   :  { %2759 = vrot.lane.b32.xlu0 %v2758_v23, %s2983_s24  ;;  %2754 = vrot.lane.b32.xlu1 %v2758_v23, %s2984_s1 }
 0x3e8   :  { %2764 = vrot.lane.b32.xlu1 %v2758_v23, %s2986_s25  ;;  %397 = vrot.lane.b32.xlu0 %v369_v24, %s2982_s3 }
 0x3ec   :  { %2769 = vrot.lane.b32.xlu0 %v2768_v7, %s2984_s1 }
 0x456   :  { %v2760_v26 = vpop.permute.xlu0 %2759  ;;  %v2755_v27 = vpop.permute.xlu1 %2754 }
 0x457   :  { %v2757_v28 = vunpack.i.h.bf16 %v2755_v27  ;;  %v2756_v29 = vunpack.i.l.bf16 %v2755_v27  ;;  %v2762_v30 = vunpack.i.h.bf16 %v2760_v26  ;;  %v2761_v31 = vunpack.i.l.bf16 %v2760_v26 }
 0x459   :  { %v370_v32 = vpack.c.bf16 %v2757_v28, %v2756_v29  ;;  %v371_v38 = vpack.c.bf16 %v2762_v30, %v2761_v31 }
 0x45a   :  { %v2765_v33 = vpop.permute.xlu1 %2764  ;;  %v398_v34 = vpop.permute.xlu0 %397 }
 0x45b   :  { %v2767_v35 = vunpack.i.h.bf16 %v2765_v33  ;;  %v2766_v36 = vunpack.i.l.bf16 %v2765_v33  ;;  %v404_v37 = vsel %vm399_vm2, %v398_v34, 0  ;;  %448 = vrot.lane.b32.xlu1 %v370_v32, %s2982_s3 }
 0x45c   :  { %2548 = vmatpush3.bf16.xpose.msra.mxu1 %v404_v37 }
 0x45d   :  { %v372_v39 = vpack.c.bf16 %v2767_v35, %v2766_v36  ;;  %2559 = vmatprep.subr.bf16.mxu1 %v2979_v14 }
 0x45e   :  { %v2770_v43 = vpop.permute.xlu0 %2769 }
 0x45f   :  { %498 = vrot.lane.b32.xlu1 %v371_v38, %s2982_s3  ;;  %548 = vrot.lane.b32.xlu0 %v372_v39, %s2982_s3  ;;  %v2772_v47 = vunpack.i.h.bf16 %v2770_v43  ;;  %v2771_v48 = vunpack.i.l.bf16 %v2770_v43 }
 0x461   :  { %v346_v52 = vpack.c.bf16 %v2772_v47, %v2771_v48 }
 0x463   :  { %2774 = vrot.lane.b32.xlu1 %v2768_v7, %s2983_s24  ;;  %2779 = vrot.lane.b32.xlu0 %v2768_v7, %s2986_s25 }
 0x464   :  { %2550 = vmatmul.mubr.msk.bf16.vlgmr.msra.gmra.mrb[12].mxu1 %vm399_vm2, %v345_v6 }
 0x465   :  { %2561 = vmatprep.mubr.msk.bf16.mxu1 %vm2980_vm1, %v2979_v14 }
 0x467   :  { %81 = vperm.xlu1 %2783, %v76_v40   ;;  %86 = vperm.xlu0 %2784, %v77_v41  }
 0x4cd   :  { %v449_v44 = vpop.permute.xlu1 %448 }
 0x4ce   :  { %v454_v46 = vsel %vm399_vm2, %v449_v44, 0 }
 0x4cf   :  { %2554 = vmatpush3.bf16.xpose.msra.mxu0 %v454_v46 }
 0x4d0   :  { %2565 = vmatprep.subr.bf16.mxu0 %v2979_v14 }
 0x4d1   :  { %v499_v49 = vpop.permute.xlu1 %498  ;;  %v549_v50 = vpop.permute.xlu0 %548 }
 0x4d2   :  { %v504_v51 = vsel %vm399_vm2, %v499_v49, 0  ;;  %v554_v57 = vsel %vm399_vm2, %v549_v50, 0 }
 0x4d3   :  { %2560 = vmatpush3.bf16.xpose.msra.mxu1 %v504_v51 }
 0x4d4   :  { %2571 = vmatprep.subr.bf16.mxu1 %v2979_v14 }
 0x4d5   :  { %v2775_v55 = vpop.permute.xlu1 %2774  ;;  %v2780_v56 = vpop.permute.xlu0 %2779 }
 0x4d6   :  { %v2777_v58 = vunpack.i.h.bf16 %v2775_v55  ;;  %v2776_v59 = vunpack.i.l.bf16 %v2775_v55  ;;  %2556 = vmatmul.mubr.msk.bf16.vlgmr.msra.gmra.mrb[0].mxu0 %vm399_vm2, %v346_v52  ;;  %v2782_v61 = vunpack.i.h.bf16 %v2780_v56  ;;  %v2781_v62 = vunpack.i.l.bf16 %v2780_v56 }
 0x4d7   :  { %2566 = vmatpush3.bf16.xpose.msra.mxu0 %v554_v57  ;;  %2567 = vmatprep.mubr.msk.bf16.mxu0 %vm2980_vm1, %v2979_v14 }
 0x4d8   :  { %v347_v60 = vpack.c.bf16 %v2777_v58, %v2776_v59  ;;  %2577 = vmatprep.subr.bf16.mxu0 %v2979_v14  ;;  %v348_v63 = vpack.c.bf16 %v2782_v61, %v2781_v62 }
 0x4da   :  { %2562 = vmatmul.mubr.msk.bf16.vlgmr.msra.gmra.mrb[16].mxu1 %vm399_vm2, %v347_v60 }
 0x4db   :  { %2573 = vmatprep.mubr.msk.bf16.mxu1 %vm2980_vm1, %v2979_v14 }
 0x4de   :  { %2568 = vmatmul.mubr.msk.bf16.vlgmr.msra.gmra.mrb[4].mxu0 %vm399_vm2, %v348_v63 }
 0x4df   :  { %2579 = vmatprep.mubr.msk.bf16.mxu0 %vm2980_vm1, %v2979_v14 }
 0x4e6   :  { %v82_v3 = vpop.permute.xlu1 %81  ;;  %v87_v4 = vpop.permute.xlu0 %86 }
 0x4e7   :  { %vm95_vm3 = vcmp.eq.f32.partialorder %v82_v3, %v2362_v2  ;;  %vm96_vm4 = vcmp.eq.f32.partialorder %v87_v4, %v2362_v2 }
 0x4e8   :  { %v3254_v6 = vsel %vm95_vm3, 0.0, %v2987_v5  ;;  %v3256_v8 = vsel %vm96_vm4, 0.0, %v2987_v5 }
 0x537   :  { %v440_v7 = vpop.f32.mrb[12].mxu1 }
 0x538   :  { %v441_v9 = vadd.f32 %v440_v7, %v3254_v6  ;;  %v2551_v10 = vpop.f32.mrb[13].mxu1 }
 0x539   :  { %v443_v11 = vpop.f32.mrb[14].mxu1 }
 0x53a   :  { %v444_v12 = vadd.f32 %v443_v11, %v3256_v8  ;;  %v2552_v13 = vpop.f32.mrb[15].mxu1  ;;  %v598_v17 = vsel %vm597_vm5, %v441_v9, -inf }
 0x53b   :  { %599 = vmax.xlane.f32.xlu1 %v598_v17 }
 0x53c   :  { %v601_v18 = vsel %vm597_vm5, %v444_v12, -inf }
 0x53d   :  { %602 = vmax.xlane.f32.xlu0 %v601_v18 }
 0x5a9   :  { %v490_v19 = vpop.f32.mrb[0].mxu0 }
 0x5aa   :  { %v491_v20 = vadd.f32 %v490_v19, %v3254_v6  ;;  %v2557_v21 = vpop.f32.mrb[1].mxu0 }
 0x5ab   :  { %v493_v22 = vpop.f32.mrb[2].mxu0 }
 0x5ac   :  { %v494_v23 = vadd.f32 %v493_v22, %v3256_v8  ;;  %v2558_v24 = vpop.f32.mrb[3].mxu0  ;;  %v604_v25 = vsel %vm597_vm5, %v491_v20, -inf }
 0x5ad   :  { %v540_v26 = vpop.f32.mrb[16].mxu1  ;;  %605 = vmax.xlane.f32.xlu0 %v604_v25 }
 0x5ae   :  { %v541_v27 = vadd.f32 %v540_v26, %v3254_v6  ;;  %v2563_v28 = vpop.f32.mrb[17].mxu1  ;;  %v607_v29 = vsel %vm597_vm5, %v494_v23, -inf }
 0x5af   :  { %v543_v30 = vpop.f32.mrb[18].mxu1  ;;  %608 = vmax.xlane.f32.xlu1 %v607_v29 }
 0x5b0   :  { %v544_v31 = vadd.f32 %v543_v30, %v3256_v8  ;;  %v2564_v32 = vpop.f32.mrb[19].mxu1  ;;  %v610_v33 = vsel %vm597_vm5, %v541_v27, -inf }
 0x5b1   :  { %611 = vmax.xlane.f32.xlu0 %v610_v33  ;;  %v590_v34 = vpop.f32.mrb[4].mxu0 }
 0x5b2   :  { %v591_v35 = vadd.f32 %v590_v34, %v3254_v6  ;;  %v2569_v36 = vpop.f32.mrb[5].mxu0  ;;  %v613_v37 = vsel %vm597_vm5, %v544_v31, -inf }
 0x5b3   :  { %614 = vmax.xlane.f32.xlu1 %v613_v37  ;;  %v593_v38 = vpop.f32.mrb[6].mxu0 }
 0x5b4   :  { %v594_v39 = vadd.f32 %v593_v38, %v3256_v8  ;;  %v2570_v40 = vpop.f32.mrb[7].mxu0  ;;  %v616_v41 = vsel %vm597_vm5, %v591_v35, -inf }
 0x5b5   :  { %617 = vmax.xlane.f32.xlu0 %v616_v41 }
 0x5b6   :  { %v619_v43 = vsel %vm597_vm5, %v594_v39, -inf }
 0x5b7   :  { %620 = vmax.xlane.f32.xlu1 %v619_v43 }
 0x5c8   :  { %2791 = vrot.lane.b32.xlu1 %v3184_v54, %s2983_s24  ;;  %v600_v48 = vpop.xlane.xlu1 %599 }
 0x5c9   :  { %v622_v49 = vsub.f32 %v441_v9, %v600_v48 }
 0x5ca   :  { %v603_v44 = vpop.xlane.xlu0 %602 }
 0x5cb   :  { %2786 = vrot.lane.b32.xlu0 %v3184_v54, %s2984_s1  ;;  %v623_v46 = vsub.f32 %v444_v12, %v603_v44  ;;  %v630_v50 = vmul.f32 1.442695, %v622_v49 }
 0x5cc   :  { %2796 = vrot.lane.b32.xlu1 %v3184_v54, %s2986_s25 }
 0x5cd   :  { %v632_v47 = vmul.f32 1.442695, %v623_v46 }
 0x5cf   :  { %2879 = vpow2.f32 %v632_v47 }
 0x5d0   :  { %690 = vrot.lane.b32.xlu1 %v3182_v53, %s2988_s5  ;;  %2881 = vpow2.f32 %v630_v50 }
 0x5d9   :  { %v3282_v51 = vpop.eup %2879 }
 0x5da   :  { %v649_v52 = vsel %vm597_vm5, %v3282_v51, 0.0  ;;  %v3286_v55 = vpop.eup %2881 }
 0x5db   :  { %v646_v54 = vsel %vm597_vm5, %v3286_v55, 0.0 }
 0x5ea   :  { %650 = vadd.xlane.f32.xlu0 %v649_v52 }
 0x5f4   :  { %647 = vadd.xlane.f32.xlu1 %v646_v54 }
 0x63a   :  { %v606_v53 = vpop.xlane.xlu0 %605 }
 0x63b   :  { %v624_v56 = vsub.f32 %v491_v20, %v606_v53 }
 0x63c   :  { %v609_v57 = vpop.xlane.xlu1 %608 }
 0x63d   :  { %v634_v58 = vmul.f32 1.442695, %v624_v56  ;;  %v625_v59 = vsub.f32 %v494_v23, %v609_v57 }
 0x63e   :  { %v612_v60 = vpop.xlane.xlu0 %611 }
 0x63f   :  { %2883 = vpow2.f32 %v634_v58  ;;  %v636_v61 = vmul.f32 1.442695, %v625_v59  ;;  %v626_v62 = vsub.f32 %v541_v27, %v612_v60 }
 0x640   :  { %v615_v63 = vpop.xlane.xlu1 %614 }
 0x641   :  { %2885 = vpow2.f32 %v636_v61  ;;  %v638_v2 = vmul.f32 1.442695, %v626_v62  ;;  %v627_v3 = vsub.f32 %v544_v31, %v615_v63 }
 0x642   :  { %v618_v4 = vpop.xlane.xlu0 %617 }
 0x643   :  { %2887 = vpow2.f32 %v638_v2  ;;  %v640_v5 = vmul.f32 1.442695, %v627_v3  ;;  %v628_v7 = vsub.f32 %v591_v35, %v618_v4 }
 0x644   :  { %v621_v9 = vpop.xlane.xlu1 %620 }
 0x645   :  { %2889 = vpow2.f32 %v640_v5  ;;  %v642_v10 = vmul.f32 1.442695, %v628_v7  ;;  %v629_v11 = vsub.f32 %v594_v39, %v621_v9 }
 0x646   :  { %v2787_v36 = vpop.permute.xlu0 %2786 }
 0x647   :  { %2891 = vpow2.f32 %v642_v10  ;;  %v644_v12 = vmul.f32 1.442695, %v629_v11  ;;  %v2789_v38 = vunpack.i.h.bf16 %v2787_v36  ;;  %v2788_v39 = vunpack.i.l.bf16 %v2787_v36 }
 0x648   :  { %v2792_v13 = vpop.permute.xlu1 %2791 }
 0x649   :  { %v3290_v17 = vpop.eup %2883  ;;  %2893 = vpow2.f32 %v644_v12  ;;  %v2794_v31 = vunpack.i.h.bf16 %v2792_v13  ;;  %v2793_v32 = vunpack.i.l.bf16 %v2792_v13  ;;  %v393_v40 = vpack.c.bf16 %v2789_v38, %v2788_v39 }
 0x64a   :  { %v652_v18 = vsel %vm597_vm5, %v3290_v17, 0.0 }
 0x64b   :  { %v2886_v19 = vpop.eup %2885  ;;  %653 = vadd.xlane.f32.xlu0 %v652_v18  ;;  %v394_v33 = vpack.c.bf16 %v2794_v31, %v2793_v32 }
 0x64c   :  { %v2797_v20 = vpop.permute.xlu1 %2796  ;;  %v655_v22 = vsel %vm597_vm5, %v2886_v19, 0.0 }
 0x64d   :  { %v3294_v21 = vpop.eup %2887  ;;  %v2799_v34 = vunpack.i.h.bf16 %v2797_v20  ;;  %v2798_v35 = vunpack.i.l.bf16 %v2797_v20 }
 0x64e   :  { %v658_v23 = vsel %vm597_vm5, %v3294_v21, 0.0 }
 0x64f   :  { %v3299_v24 = vpop.eup %2889  ;;  %656 = vadd.xlane.f32.xlu0 %v655_v22  ;;  %659 = vadd.xlane.f32.xlu1 %v658_v23  ;;  %v395_v37 = vpack.c.bf16 %v2799_v34, %v2798_v35  ;;  %v913_v22 = vld [vmem:[%s3811_s10 + $0x8] sm:$0xff] }
 0x650   :  { %v691_v25 = vpop.permute.xlu1 %690  ;;  %v661_v27 = vsel %vm597_vm5, %v3299_v24, 0.0 }
 0x651   :  { %v3301_v26 = vpop.eup %2891  ;;  %2572 = vmatpush3.bf16.msra.mxu1 %v691_v25  ;;  %v914_v25 = vld [vmem:[%s3811_s10 + $0x10] sm:$0xff] }
 0x652   :  { %v664_v28 = vsel %vm597_vm5, %v3301_v26, 0.0  ;;  %2583 = vmatprep.subr.bf16.mxu1 %v2979_v14 }
 0x653   :  { %v3308_v29 = vpop.eup %2893  ;;  %662 = vadd.xlane.f32.xlu0 %v661_v27  ;;  %665 = vadd.xlane.f32.xlu1 %v664_v28 }
 0x654   :  { %v667_v30 = vsel %vm597_vm5, %v3308_v29, 0.0 }
 0x657   :  { %668 = vadd.xlane.f32.xlu0 %v667_v30 }
 0x664   :  { %786 = vrot.lane.b32.xlu1 %v394_v33, %s2988_s5 }
 0x668   :  { %834 = vrot.lane.b32.xlu1 %v395_v37, %s2988_s5 }
 0x66d   :  { %738 = vrot.lane.b32.xlu0 %v393_v40, %s2988_s5 }
 0x677   :  { %v651_v41 = vpop.xlane.xlu0 %650 }
 0x678   :  { %2895 = vrcp.f32 %v651_v41 }
 0x681   :  { %v648_v43 = vpop.xlane.xlu1 %647 }
 0x682   :  { %2897 = vrcp.f32 %v648_v43  ;;  %v2896_v44 = vpop.eup %2895 }
 0x683   :  { %v679_v47 = vmul.f32 %v2896_v44, %v3282_v51 }
 0x68c   :  { %v2898_v46 = vpop.eup %2897 }
 0x68d   :  { %v678_v48 = vmul.f32 %v2898_v46, %v3286_v55 }
 0x68f   :  { %v686_v49 = vpack.c.bf16 %v679_v47, %v678_v48 }
 0x691   :  { %2574 = vmatmul.mubr.msk.bf16.vlgmr.msra.gmra.mrb[20].mxu1 %vm597_vm5, %v686_v49 }
 0x692   :  { %2585 = vmatprep.mubr.msk.bf16.mxu1 %vm2980_vm1, %v2979_v14 }
 0x6d8   :  { %v654_v50 = vpop.xlane.xlu0 %653 }
 0x6d9   :  { %2899 = vrcp.f32 %v654_v50 }
 0x6dc   :  { %v657_v52 = vpop.xlane.xlu0 %656  ;;  %v660_v54 = vpop.xlane.xlu1 %659 }
 0x6dd   :  { %2901 = vrcp.f32 %v657_v52 }
 0x6de   :  { %2903 = vrcp.f32 %v660_v54 }
 0x6e0   :  { %v663_v53 = vpop.xlane.xlu0 %662  ;;  %v666_v56 = vpop.xlane.xlu1 %665 }
 0x6e1   :  { %2905 = vrcp.f32 %v663_v53 }
 0x6e2   :  { %2907 = vrcp.f32 %v666_v56 }
 0x6e3   :  { %v2900_v58 = vpop.eup %2899 }
 0x6e4   :  { %v669_v57 = vpop.xlane.xlu0 %668  ;;  %v787_v51 = vpop.permute.xlu1 %786  ;;  %v680_v59 = vmul.f32 %v2900_v58, %v3290_v17 }
 0x6e5   :  { %2909 = vrcp.f32 %v669_v57  ;;  %2584 = vmatpush3.bf16.msra.mxu1 %v787_v51 }
 0x6e6   :  { %2595 = vmatprep.subr.bf16.mxu1 %v2979_v14 }
 0x6e7   :  { %v2902_v55 = vpop.eup %2901 }
 0x6e8   :  { %v681_v60 = vmul.f32 %v2902_v55, %v2886_v19  ;;  %v739_v61 = vpop.permute.xlu0 %738  ;;  %v2904_v62 = vpop.eup %2903 }
 0x6e9   :  { %2578 = vmatpush3.bf16.msra.mxu0 %v739_v61  ;;  %v682_v3 = vmul.f32 %v2904_v62, %v3294_v21  ;;  %v835_v5 = vpop.permute.xlu1 %834  ;;  %v912_v21 = vld [vmem:[%s3811_s10] sm:$0xff] }
 0x6ea   :  { %v687_v63 = vpack.c.bf16 %v681_v60, %v680_v59  ;;  %2589 = vmatprep.subr.bf16.mxu0 %v2979_v14  ;;  %v917_v23 = vpack.c.bf16 %v913_v22, %v912_v21  ;;  %v2378_v61 = vld [vmem:[%s3812_s11] ss:$0 sm:$0xff] }
 0x6eb   :  { %v2906_v2 = vpop.eup %2905  ;;  %v1018_v22 = vld [vmem:[%s3813_s14] sm:$0xff] }
 0x6ec   :  { %v683_v4 = vmul.f32 %v2906_v2, %v3299_v24  ;;  %2580 = vmatmul.mubr.msk.bf16.vlgmr.msra.gmra.mrb[8].mxu0 %vm597_vm5, %v687_v63  ;;  %v2908_v7 = vpop.eup %2907 }
 0x6ed   :  { %2590 = vmatpush3.bf16.msra.mxu0 %v835_v5  ;;  %2591 = vmatprep.mubr.msk.bf16.mxu0 %vm2980_vm1, %v2979_v14  ;;  %v684_v11 = vmul.f32 %v2908_v7, %v3301_v26  ;;  %v915_v26 = vld [vmem:[%s3811_s10 + $0x18] sm:$0xff] }
 0x6ee   :  { %v688_v9 = vpack.c.bf16 %v683_v4, %v682_v3  ;;  %2603 = vmatprep.subr.bf16.mxu0 %v2979_v14  ;;  %v918_v28 = vpack.c.bf16 %v915_v26, %v914_v25  ;;  %v1020_v25 = vld [vmem:[%s3813_s14 + $0x10] sm:$0xff]  ;;  %v1021_v26 = vld [vmem:[%s3813_s14 + $0x18] sm:$0xff] }
 0x6ef   :  { %v2910_v10 = vpop.eup %2909 }
 0x6f0   :  { %v685_v12 = vmul.f32 %v2910_v10, %v3308_v29  ;;  %2586 = vmatmul.mubr.msk.bf16.vlgmr.msra.gmra.mrb[24].mxu1 %vm597_vm5, %v688_v9 }
 0x6f1   :  { %2599 = vmatprep.mubr.msk.bf16.mxu1 %vm2980_vm1, %v2979_v14  ;;  %2596 = vmatpush3.bf16.msra.mxu1 %v917_v23  ;;  %v1019_v23 = vld [vmem:[%s3813_s14 + $0x8] sm:$0xff] }
 0x6f2   :  { %v689_v13 = vpack.c.bf16 %v685_v12, %v684_v11  ;;  %2597 = vmatprep.subr.bf16.mxu1 %v2979_v14 }
 0x6f4   :  { %2592 = vmatmul.mubr.msk.bf16.vlgmr.msra.gmra.mrb[12].mxu0 %vm597_vm5, %v689_v13 }
 0x6f5   :  { %2607 = vmatprep.mubr.msk.bf16.mxu0 %vm2980_vm1, %v2979_v14  ;;  %2598 = vmatpush3.bf16.msra.mxu1 %v918_v28 }
 0x6f6   :  { %2611 = vmatprep.subr.bf16.mxu1 %v2979_v14 }
 0x764   :  { %v730_v17 = vpop.f32.mrb[20].mxu1 }
 0x765   :  { %v2575_v18 = vpop.f32.mrb[21].mxu1 }
 0x766   :  { %v733_v19 = vpop.f32.mrb[22].mxu1 }
 0x767   :  { %v2576_v20 = vpop.f32.mrb[23].mxu1 }
 0x7bf   :  { %v778_v24 = vpop.f32.mrb[8].mxu0 }
 0x7c0   :  { %v2581_v27 = vpop.f32.mrb[9].mxu0 }
 0x7c1   :  { %v781_v29 = vpop.f32.mrb[10].mxu0  ;;  %v1024_v27 = vpack.c.bf16 %v1021_v26, %v1020_v25 }
 0x7c2   :  { %v2800_v30 = vpack.i.bf16 %v781_v29, %v778_v24  ;;  %v2582_v31 = vpop.f32.mrb[11].mxu0  ;;  %v1023_v24 = vpack.c.bf16 %v1019_v23, %v1018_v22 }
 0x7c3   :  { %v826_v32 = vpop.f32.mrb[24].mxu1 }
 0x7c4   :  { %v2587_v33 = vpop.f32.mrb[25].mxu1  ;;  %2801 = vrot.lane.b32.xlu1 %v2800_v30, %s3829_s21  ;;  %2604 = vmatpush3.bf16.msra.mxu0 %v1023_v24 }
 0x7c5   :  { %v829_v34 = vpop.f32.mrb[26].mxu1  ;;  %2605 = vmatprep.subr.bf16.mxu0 %v2979_v14 }
 0x7c6   :  { %v2805_v35 = vpack.i.bf16 %v829_v34, %v826_v32  ;;  %v2588_v36 = vpop.f32.mrb[27].mxu1 }
 0x7c7   :  { %v874_v37 = vpop.f32.mrb[12].mxu0  ;;  %v2379_v36 = vld [vmem:[%s3814_s12] ss:$0 sm:$0xff] }
 0x7c8   :  { %2806 = vrot.lane.b32.xlu0 %v2805_v35, %s3828_s8  ;;  %v2593_v38 = vpop.f32.mrb[13].mxu0  ;;  %2606 = vmatpush3.bf16.msra.mxu0 %v1024_v27 }
 0x7c9   :  { %v877_v39 = vpop.f32.mrb[14].mxu0  ;;  %2631 = vmatprep.subr.bf16.mxu0 %v2979_v14 }
 0x7ca   :  { %v2810_v40 = vpack.i.bf16 %v877_v39, %v874_v37  ;;  %v2594_v41 = vpop.f32.mrb[15].mxu0 }
 0x7cc   :  { %2811 = vrot.lane.b32.xlu1 %v2810_v40, %s3827_s6  ;;  %v2380_v40 = vld [vmem:[%s3815_s13] ss:$0 sm:$0xff] }
 0x836   :  { %v2802_v43 = vpop.permute.xlu1 %2801 }
 0x837   :  { %v2804_v46 = vunpack.i.h.bf16 %v2802_v43  ;;  %v2803_v47 = vunpack.i.l.bf16 %v2802_v43 }
 0x839   :  { %v906_v52 = vsel %vm399_vm2, %v733_v19, %v2804_v46  ;;  %v905_v54 = vsel %vm399_vm2, %v730_v17, %v2803_v47  ;;  %v1130_v47 = vld [vmem:[%s3816_s16] sm:$0xff] }
 0x83a   :  { %v2807_v44 = vpop.permute.xlu0 %2806 }
 0x83b   :  { %v2809_v48 = vunpack.i.h.bf16 %v2807_v44  ;;  %v2808_v49 = vunpack.i.l.bf16 %v2807_v44 }
 0x83d   :  { %v907_v57 = vsel %vm597_vm5, %v905_v54, %v2808_v49  ;;  %v908_v51 = vsel %vm597_vm5, %v906_v52, %v2809_v48  ;;  %v1131_v48 = vld [vmem:[%s3816_s16 + $0x8] sm:$0xff]  ;;  %v1133_v52 = vld [vmem:[%s3816_s16 + $0x18] sm:$0xff] }
 0x83e   :  { %v2812_v50 = vpop.permute.xlu1 %2811  ;;  %v1147_v49 = vpack.c.bf16 %v1131_v48, %v1130_v47 }
 0x83f   :  { %v2814_v53 = vunpack.i.h.bf16 %v2812_v50  ;;  %v2813_v56 = vunpack.i.l.bf16 %v2812_v50  ;;  %v1132_v50 = vld [vmem:[%s3816_s16 + $0x10] sm:$0xff] }
 0x840   :  { %v1148_v54 = vpack.c.bf16 %v1133_v52, %v1132_v50 }
 0x841   :  { %v911_v58 = vsel %vm909_vm6, %v908_v51, %v2814_v53  ;;  %v910_v55 = vsel %vm909_vm6, %v907_v57, %v2813_v56  ;;  %v1134_v53 = vld [vmem:[%s3816_s16 + $0x20] sm:$0xff]  ;;  %v1135_v56 = vld [vmem:[%s3816_s16 + $0x28] sm:$0xff]  ;;  %v1136_v51 = vld [vmem:[%s3816_s16 + $0x30] sm:$0xff] }
 0x842   :  { %v916_v59 = vpack.c.bf16 %v911_v58, %v910_v55  ;;  %v1149_v57 = vpack.c.bf16 %v1135_v56, %v1134_v53  ;;  %v1137_v58 = vld [vmem:[%s3816_s16 + $0x38] sm:$0xff] }
 0x843   :  { %v1150_v55 = vpack.c.bf16 %v1137_v58, %v1136_v51 }
 0x844   :  { %2600 = vmatmul.mubr.msk.bf16.vlgmr.msra.gmra.mrb[28].mxu1 %vm103_vm0, %v916_v59  ;;  %v1138_v59 = vld [vmem:[%s3816_s16 + $0x40] sm:$0xff] }
 0x845   :  { %2627 = vmatprep.mubr.msk.bf16.mxu1 %vm2980_vm1, %v2979_v14  ;;  %2612 = vmatpush3.bf16.msra.mxu1 %v1147_v49 }
 0x846   :  { %2613 = vmatprep.subr.bf16.mxu1 %v2979_v14 }
 0x849   :  { %2614 = vmatpush3.bf16.msra.mxu1 %v1148_v54 }
 0x84a   :  { %2615 = vmatprep.subr.bf16.mxu1 %v2979_v14 }
 0x84d   :  { %2616 = vmatpush3.bf16.msra.mxu1 %v1149_v57 }
 0x84e   :  { %2617 = vmatprep.subr.bf16.mxu1 %v2979_v14 }
 0x851   :  { %2618 = vmatpush3.bf16.msra.mxu1 %v1150_v55 }
 0x852   :  { %2619 = vmatprep.subr.bf16.mxu1 %v2979_v14 }
 0x917   :  { %v956_v60 = vpop.f32.mrb[28].mxu1 }
 0x918   :  { %v963_v62 = vadd.f32 %v956_v60, %v3101_v0  ;;  %v2601_v63 = vpop.f32.mrb[29].mxu1  ;;  %v1139_v60 = vld [vmem:[%s3816_s16 + $0x48] sm:$0xff] }
 0x919   :  { %v959_v2 = vpop.f32.mrb[30].mxu1  ;;  %v1141_v63 = vld [vmem:[%s3816_s16 + $0x58] sm:$0xff] }
 0x91a   :  { %v3367_v3 = vadd.f32 %v2378_v61, %v963_v62  ;;  %v964_v4 = vadd.f32 %v959_v2, %v3106_v1  ;;  %v2602_v5 = vpop.f32.mrb[31].mxu1  ;;  %v1140_v62 = vld [vmem:[%s3816_s16 + $0x50] sm:$0xff] }
 0x91b   :  { %v1152_v2 = vpack.c.bf16 %v1141_v63, %v1140_v62  ;;  %v1143_v5 = vld [vmem:[%s3816_s16 + $0x68] sm:$0xff] }
 0x91c   :  { %v3370_v7 = vadd.f32 %v2378_v61, %v964_v4  ;;  %v976_v9 = vsel %vm103_vm0, %v3367_v3, 0.0  ;;  %v1151_v61 = vpack.c.bf16 %v1139_v60, %v1138_v59  ;;  %v1142_v4 = vld [vmem:[%s3816_s16 + $0x60] sm:$0xff] }
 0x91d   :  { %977 = vadd.xlane.f32.xlu0 %v976_v9  ;;  %v1153_v9 = vpack.c.bf16 %v1143_v5, %v1142_v4 }
 0x91e   :  { %v979_v10 = vsel %vm103_vm0, %v3370_v7, 0.0  ;;  %2620 = vmatpush3.bf16.msra.mxu1 %v1151_v61  ;;  %v2992_v61 = vmov -1.0  }
 0x91f   :  { %980 = vadd.xlane.f32.xlu1 %v979_v10  ;;  %2621 = vmatprep.subr.bf16.mxu1 %v2979_v14  ;;  %v1144_v10 = vld [vmem:[%s3816_s16 + $0x70] sm:$0xff] }
 0x922   :  { %2622 = vmatpush3.bf16.msra.mxu1 %v1152_v2 }
 0x923   :  { %2623 = vmatprep.subr.bf16.mxu1 %v2979_v14 }
 0x926   :  { %2624 = vmatpush3.bf16.msra.mxu1 %v1153_v9 }
 0x927   :  { %2625 = vmatprep.subr.bf16.mxu1 %v2979_v14 }
 0x9aa   :  { %v978_v11 = vpop.xlane.xlu0 %977 }
 0x9ab   :  { %v982_v12 = vmul.f32 0.03125, %v978_v11  ;;  %v1145_v11 = vld [vmem:[%s3816_s16 + $0x78] sm:$0xff] }
 0x9ac   :  { %v981_v0 = vpop.xlane.xlu1 %980 }
 0x9ad   :  { %v984_v13 = vsub.f32 %v3367_v3, %v982_v12  ;;  %v983_v17 = vmul.f32 0.03125, %v981_v0  ;;  %v1154_v12 = vpack.c.bf16 %v1145_v11, %v1144_v10  ;;  %v2381_v0 = vld [vmem:[%s3817_s15] ss:$0 sm:$0xff] }
 0x9af   :  { %v985_v18 = vsub.f32 %v3370_v7, %v983_v17  ;;  %v986_v1 = vmul.f32 %v984_v13, %v984_v13  ;;  %2626 = vmatpush3.bf16.msra.mxu1 %v1154_v12 }
 0x9b0   :  { %2661 = vmatprep.subr.bf16.mxu1 %v2979_v14 }
 0x9b1   :  { %v988_v19 = vsel %vm103_vm0, %v986_v1, 0.0  ;;  %v987_v20 = vmul.f32 %v985_v18, %v985_v18 }
 0x9b2   :  { %989 = vadd.xlane.f32.xlu0 %v988_v19 }
 0x9b3   :  { %v991_v21 = vsel %vm103_vm0, %v987_v20, 0.0 }
 0x9b6   :  { %992 = vadd.xlane.f32.xlu0 %v991_v21 }
 0xa3f   :  { %v990_v28 = vpop.xlane.xlu0 %989 }
 0xa40   :  { %v994_v29 = vmul.f32 0.03125, %v990_v28 }
 0xa42   :  { %v996_v30 = vadd.f32 1e-05, %v994_v29 }
 0xa43   :  { %v993_v31 = vpop.xlane.xlu0 %992 }
 0xa44   :  { %2911 = vrsqrt.f32 %v996_v30  ;;  %v995_v32 = vmul.f32 0.03125, %v993_v31 }
 0xa46   :  { %v997_v33 = vadd.f32 1e-05, %v995_v32 }
 0xa48   :  { %2913 = vrsqrt.f32 %v997_v33 }
 0xa4e   :  { %v2912_v34 = vpop.eup %2911 }
 0xa4f   :  { %v1000_v35 = vmul.f32 %v2912_v34, %v984_v13 }
 0xa51   :  { %v1008_v38 = vmul.f32 %v2379_v36, %v1000_v35 }
 0xa52   :  { %v2914_v37 = vpop.eup %2913 }
 0xa53   :  { %v1001_v39 = vmul.f32 %v2914_v37, %v985_v18  ;;  %v1016_v43 = vadd.f32 %v2380_v40, %v1008_v38 }
 0xa55   :  { %v1009_v41 = vmul.f32 %v2379_v36, %v1001_v39 }
 0xa57   :  { %v1017_v44 = vadd.f32 %v2380_v40, %v1009_v41 }
 0xa59   :  { %v1022_v46 = vpack.c.bf16 %v1017_v44, %v1016_v43 }
 0xa5b   :  { %2608 = vmatmul.mubr.msk.bf16.vlgmr.msra.gmra.mrb[16].mxu0 %vm103_vm0, %v1022_v46 }
 0xa5c   :  { %2635 = vmatprep.mubr.msk.bf16.mxu0 %vm2980_vm1, %v2979_v14 }
 0xb2e   :  { %v1069_v13 = vpop.f32.mrb[16].mxu0 }
 0xb2f   :  { %v1070_v17 = vadd.f32 %v2381_v0, %v1069_v13  ;;  %v2609_v18 = vpop.f32.mrb[17].mxu0 }
 0xb30   :  { %v1072_v1 = vpop.f32.mrb[18].mxu0 }
 0xb31   :  { %v1078_v19 = vmul.f32 0.70710677, %v1070_v17  ;;  %v1073_v20 = vadd.f32 %v2381_v0, %v1072_v1  ;;  %v2610_v21 = vpop.f32.mrb[19].mxu0  ;;  %v1076_v11 = vmul.f32 0.5, %v1070_v17 }
 0xb32   :  { %v2383_v21 = vld [vmem:[%s3818_s17] ss:$0 sm:$0xff] }
 0xb33   :  { %v1084_v22 = vand.u32 2147483647, %v1078_v19  ;;  %v1079_v23 = vmul.f32 0.70710677, %v1073_v20  ;;  %vm1080_vm7 = vcmp.ge.f32.partialorder %v1078_v19, 0.0  ;;  %v1077_v12 = vmul.f32 0.5, %v1073_v20 }
 0xb34   :  { %v1082_v62 = vsel %vm1080_vm7, 1.0, %v2992_v61 }
 0xb35   :  { %v1086_v24 = vmul.f32 0.3275911, %v1084_v22  ;;  %v1085_v25 = vand.u32 2147483647, %v1079_v23  ;;  %v1112_v29 = vmul.f32 %v1084_v22, %v1084_v22  ;;  %vm1081_vm8 = vcmp.ge.f32.partialorder %v1079_v23, 0.0 }
 0xb36   :  { %v1083_v5 = vsel %vm1081_vm8, 1.0, %v2992_v61 }
 0xb37   :  { %v1088_v26 = vadd.f32 1.0, %v1086_v24  ;;  %v1087_v27 = vmul.f32 0.3275911, %v1085_v25  ;;  %v1113_v30 = vmul.f32 %v1085_v25, %v1085_v25  ;;  %v1114_v32 = vsub.f32 0.0, %v1112_v29 }
 0xb39   :  { %2915 = vrcp.f32 %v1088_v26  ;;  %v1089_v28 = vadd.f32 1.0, %v1087_v27  ;;  %v1115_v36 = vsub.f32 0.0, %v1113_v30  ;;  %v1116_v37 = vmul.f32 1.442695, %v1114_v32 }
 0xb3b   :  { %2917 = vrcp.f32 %v1089_v28  ;;  %v1118_v43 = vmul.f32 1.442695, %v1115_v36 }
 0xb3c   :  { %2919 = vpow2.f32 %v1116_v37  ;;  %v2388_v37 = vld [vmem:[%s3836_s26 + $0x20] sm:$0xff] }
 0xb3d   :  { %2921 = vpow2.f32 %v1118_v43 }
 0xb43   :  { %v2916_v31 = vpop.eup %2915 }
 0xb44   :  { %v1094_v33 = vmul.f32 1.0614054, %v2916_v31 }
 0xb45   :  { %v2918_v34 = vpop.eup %2917 }
 0xb46   :  { %v1096_v35 = vadd.f32 -1.4531521, %v1094_v33  ;;  %v1095_v38 = vmul.f32 1.0614054, %v2918_v34  ;;  %v2920_v57 = vpop.eup %2919 }
 0xb47   :  { %v2922_v59 = vpop.eup %2921 }
 0xb48   :  { %v1098_v39 = vmul.f32 %v2916_v31, %v1096_v35  ;;  %v1097_v40 = vadd.f32 -1.4531521, %v1095_v38  ;;  %v2389_v38 = vld [vmem:[%s3836_s26 + $0x28] sm:$0xff] }
 0xb4a   :  { %v1100_v41 = vadd.f32 1.4214138, %v1098_v39  ;;  %v1099_v44 = vmul.f32 %v2918_v34, %v1097_v40  ;;  %v1259_v39 = vpack.c.bf16 %v2389_v38, %v2388_v37  ;;  %v2390_v40 = vld [vmem:[%s3836_s26 + $0x30] sm:$0xff] }
 0xb4c   :  { %v1102_v46 = vmul.f32 %v2916_v31, %v1100_v41  ;;  %v1101_v47 = vadd.f32 1.4214138, %v1099_v44  ;;  %2632 = vmatpush3.bf16.msra.mxu0 %v1259_v39  ;;  %v2391_v41 = vld [vmem:[%s3836_s26 + $0x38] sm:$0xff] }
 0xb4d   :  { %2633 = vmatprep.subr.bf16.mxu0 %v2979_v14  ;;  %v1260_v43 = vpack.c.bf16 %v2391_v41, %v2390_v40 }
 0xb4e   :  { %v1104_v48 = vadd.f32 -0.28449672, %v1102_v46  ;;  %v1103_v49 = vmul.f32 %v2918_v34, %v1101_v47 }
 0xb50   :  { %v1106_v50 = vmul.f32 %v2916_v31, %v1104_v48  ;;  %v1105_v52 = vadd.f32 -0.28449672, %v1103_v49  ;;  %2634 = vmatpush3.bf16.msra.mxu0 %v1260_v43 }
 0xb51   :  { %2639 = vmatprep.subr.bf16.mxu0 %v2979_v14 }
 0xb52   :  { %v1108_v54 = vadd.f32 0.2548296, %v1106_v50  ;;  %v1107_v53 = vmul.f32 %v2918_v34, %v1105_v52 }
 0xb54   :  { %v1110_v56 = vmul.f32 %v2916_v31, %v1108_v54  ;;  %v1109_v51 = vadd.f32 0.2548296, %v1107_v53  ;;  %v2386_v54 = vld [vmem:[%s3838_s27 + $0x1] ss:$0 sm:$0xff]  ;;  %s3842_s27 = smov 24  }
 0xb56   :  { %v1120_v58 = vmul.f32 %v2920_v57, %v1110_v56  ;;  %v1111_v55 = vmul.f32 %v2918_v34, %v1109_v51  ;;  %v2387_v57 = vld [vmem:[%s3839_s29 + $0x1] ss:$0 sm:$0xff] }
 0xb58   :  { %v1122_v60 = vsub.f32 1.0, %v1120_v58  ;;  %v1121_v63 = vmul.f32 %v2922_v59, %v1111_v55 }
 0xb5a   :  { %v1124_v2 = vmul.f32 %v1122_v60, %v1082_v62  ;;  %v1123_v4 = vsub.f32 1.0, %v1121_v63  ;;  %v2393_v63 = vld [vmem:[%s3807_s9 + $0x1] ss:$0 sm:$0xff] }
 0xb5c   :  { %v1126_v9 = vadd.f32 1.0, %v1124_v2  ;;  %v1125_v10 = vmul.f32 %v1123_v4, %v1083_v5 }
 0xb5e   :  { %v1127_v0 = vadd.f32 1.0, %v1125_v10  ;;  %v1128_v13 = vmul.f32 %v1126_v9, %v1076_v11 }
 0xb60   :  { %v1129_v18 = vmul.f32 %v1127_v0, %v1077_v12 }
 0xb62   :  { %v1146_v1 = vpack.c.bf16 %v1129_v18, %v1128_v13 }
 0xb64   :  { %2628 = vmatmul.mubr.bf16.vlgmr.msra.gmra.mrb[32].mxu1 %v1146_v1 }
 0xb65   :  { %2663 = vmatprep.mubr.msk.bf16.mxu1 %vm2980_vm1, %v2979_v14 }
 0xc37   :  { %v1189_v19 = vpop.f32.mrb[32].mxu1 }
 0xc38   :  { %v1196_v22 = vadd.f32 %v1189_v19, %v3367_v3  ;;  %v2629_v23 = vpop.f32.mrb[33].mxu1  ;;  %v2976_v19 = vld [vmem:[%s3808_s2] sm:$0xff] }
 0xc39   :  { %v1192_v24 = vpop.f32.mrb[34].mxu1 }
 0xc3a   :  { %v3470_v25 = vadd.f32 %v2383_v21, %v1196_v22  ;;  %v1197_v17 = vadd.f32 %v1192_v24, %v3370_v7  ;;  %v2630_v20 = vpop.f32.mrb[35].mxu1  ;;  %v2977_v24 = vld [vmem:[%s3837_s22 + $0x8] sm:$0xff] }
 0xc3b   :  { %v2978_v20 = vld [vmem:[%s3808_s2 + $0x8] sm:$0xff] }
 0xc3c   :  { %v3473_v26 = vadd.f32 %v2383_v21, %v1197_v17  ;;  %v1211_v27 = vsel %vm103_vm0, %v3470_v25, 0.0 }
 0xc3d   :  { %1212 = vadd.xlane.f32.xlu0 %v1211_v27 }
 0xc3e   :  { %v1214_v28 = vsel %vm103_vm0, %v3473_v26, 0.0 }
 0xc3f   :  { %1215 = vadd.xlane.f32.xlu1 %v1214_v28 }
 0xcca   :  { %v1213_v29 = vpop.xlane.xlu0 %1212 }
 0xccb   :  { %v1217_v30 = vmul.f32 0.03125, %v1213_v29 }
 0xccc   :  { %v1216_v3 = vpop.xlane.xlu1 %1215 }
 0xccd   :  { %v1219_v31 = vsub.f32 %v3470_v25, %v1217_v30  ;;  %v1218_v32 = vmul.f32 0.03125, %v1216_v3 }
 0xccf   :  { %v1220_v33 = vsub.f32 %v3473_v26, %v1218_v32  ;;  %v1221_v7 = vmul.f32 %v1219_v31, %v1219_v31 }
 0xcd1   :  { %v1223_v34 = vsel %vm103_vm0, %v1221_v7, 0.0  ;;  %v1222_v35 = vmul.f32 %v1220_v33, %v1220_v33 }
 0xcd2   :  { %1224 = vadd.xlane.f32.xlu0 %v1223_v34 }
 0xcd3   :  { %v1226_v36 = vsel %vm103_vm0, %v1222_v35, 0.0 }
 0xcd4   :  { %1227 = vadd.xlane.f32.xlu1 %v1226_v36 }
 0xd5f   :  { %v1225_v44 = vpop.xlane.xlu0 %1224 }
 0xd60   :  { %v1229_v46 = vmul.f32 0.03125, %v1225_v44 }
 0xd61   :  { %v1228_v47 = vpop.xlane.xlu1 %1227 }
 0xd62   :  { %v1231_v48 = vadd.f32 1e-05, %v1229_v46  ;;  %v1230_v49 = vmul.f32 0.03125, %v1228_v47 }
 0xd64   :  { %2923 = vrsqrt.f32 %v1231_v48  ;;  %v1232_v50 = vadd.f32 1e-05, %v1230_v49 }
 0xd66   :  { %2925 = vrsqrt.f32 %v1232_v50 }
 0xd6e   :  { %v2924_v52 = vpop.eup %2923 }
 0xd6f   :  { %v1235_v53 = vmul.f32 %v2924_v52, %v1219_v31 }
 0xd70   :  { %v2926_v56 = vpop.eup %2925 }
 0xd71   :  { %v1243_v51 = vmul.f32 %v2386_v54, %v1235_v53  ;;  %v1236_v58 = vmul.f32 %v2926_v56, %v1220_v33 }
 0xd73   :  { %v1244_v55 = vmul.f32 %v2386_v54, %v1236_v58  ;;  %v1251_v59 = vadd.f32 %v2387_v57, %v1243_v51 }
 0xd75   :  { %v1252_v60 = vadd.f32 %v2387_v57, %v1244_v55 }
 0xd77   :  { %v1258_v62 = vpack.c.bf16 %v1252_v60, %v1251_v59 }
 0xd79   :  { %2636 = vmatmul.mubr.msk.bf16.vlgmr.msra.gmra.mrb[20].mxu0 %vm103_vm0, %v1258_v62 }
 0xd7a   :  { %2640 = vmatpush3.bf16.msra.mxu0 %v3165_v42  ;;  %2643 = vmatprep.mubr.msk.bf16.mxu0 %vm2980_vm1, %v2979_v14 }
 0xd7b   :  { %2641 = vmatprep.subr.bf16.mxu0 %v2979_v14 }
 0xd7e   :  { %2642 = vmatpush3.bf16.msra.mxu0 %v3175_v45 }
 0xd7f   :  { %2647 = vmatprep.subr.bf16.mxu0 %v2979_v14 }
 0xe4c   :  { %v1306_v2 = vpop.f32.mrb[20].mxu0 }
 0xe4d   :  { %v2637_v4 = vpop.f32.mrb[21].mxu0  ;;  %v1307_v9 = vadd.f32 %v2393_v63, %v1306_v2 }
 0xe4e   :  { %v1309_v5 = vpop.f32.mrb[22].mxu0 }
 0xe4f   :  { %v1310_v10 = vadd.f32 %v2393_v63, %v1309_v5  ;;  %v2638_v11 = vpop.f32.mrb[23].mxu0  ;;  %v1364_v37 = vmul.f32 %v1307_v9, %v3209_v15 }
 0xe51   :  { %v3513_v12 = vpack.c.bf16 %v1310_v10, %v1307_v9  ;;  %v3515_v0 = vpack.i.bf16 %v1310_v10, %v1307_v9  ;;  %v1314_v17 = vmul.f32 %v2977_v24, %v1310_v10  ;;  %v1365_v38 = vmul.f32 %v1310_v10, %v3211_v16 }
 0xe53   :  { %1367 = vrot.lane.b32.xlu0 %v3513_v12, %s2982_s3  ;;  %2644 = vmatmul.mubr.msk.bf16.vlgmr.msra.gmra.mrb[24].mxu0 %vm103_vm0, %v3513_v12 }
 0xe54   :  { %2648 = vmatpush3.bf16.msra.mxu0 %v3165_v42  ;;  %2651 = vmatprep.mubr.msk.bf16.mxu0 %vm2980_vm1, %v2979_v14  ;;  %v2975_v42 = vld [vmem:[%s3837_s22] sm:$0xff] }
 0xe55   :  { %2649 = vmatprep.subr.bf16.mxu0 %v2979_v14  ;;  %v1313_v1 = vmul.f32 %v2975_v42, %v1307_v9 }
 0xe58   :  { %2650 = vmatpush3.bf16.msra.mxu0 %v3175_v45 }
 0xe59   :  { %2655 = vmatprep.subr.bf16.mxu0 %v2979_v14 }
 0xec5   :  { %v1368_v13 = vpop.permute.xlu0 %1367 }
 0xec6   :  { %2652 = vmatmul.mubr.msk.bf16.vlgmr.msra.gmra.mrb[28].mxu0 %vm103_vm0, %v1368_v13 }
 0xec7   :  { %2657 = vmatprep.mubr.msk.bf16.mxu0 %vm2980_vm1, %v2979_v14 }
 0xf26   :  { %v1353_v18 = vpop.f32.mrb[24].mxu0 }
 0xf27   :  { %v1360_v21 = vmul.f32 %v2976_v19, %v1353_v18  ;;  %v2645_v45 = vpop.f32.mrb[25].mxu0 }
 0xf28   :  { %v1356_v22 = vpop.f32.mrb[26].mxu0 }
 0xf29   :  { %v1362_v23 = vadd.f32 %v1360_v21, %v1313_v1  ;;  %v1361_v27 = vmul.f32 %v2978_v20, %v1356_v22  ;;  %v2646_v28 = vpop.f32.mrb[27].mxu0 }
 0xf2b   :  { %v1363_v29 = vadd.f32 %v1361_v27, %v1314_v17 }
 0xf2d   :  { %v1445_v30 = vpack.c.bf16 %v1363_v29, %v1362_v23  ;;  %v2830_v3 = vpack.i.bf16 %v1363_v29, %v1362_v23 }
 0xf99   :  { %v1406_v31 = vpop.f32.mrb[28].mxu0 }
 0xf9a   :  { %v1413_v32 = vmul.f32 %v2976_v19, %v1406_v31  ;;  %v2653_v33 = vpop.f32.mrb[29].mxu0 }
 0xf9b   :  { %v1409_v7 = vpop.f32.mrb[30].mxu0 }
 0xf9c   :  { %1417 = vrot.lane.b32.xlu1 %v1413_v32, %s2981_s23  ;;  %v2654_v34 = vpop.f32.mrb[31].mxu0  ;;  %v1414_v35 = vmul.f32 %v2978_v20, %v1409_v7 }
 0xfa0   :  { %1419 = vrot.lane.b32.xlu1 %v1414_v35, %s2981_s23 }
0x100e   :  { %v1418_v36 = vpop.permute.xlu1 %1417 }
0x100f   :  { %v1423_v40 = vadd.f32 %v1418_v36, %v1364_v37 }
0x1012   :  { %v1420_v39 = vpop.permute.xlu1 %1419 }
0x1013   :  { %v1424_v41 = vadd.f32 %v1420_v39, %v1365_v38 }
0x1015   :  { %v2820_v43 = vpack.i.bf16 %v1424_v41, %v1423_v40  ;;  %v1469_v44 = vpack.c.bf16 %v1424_v41, %v1423_v40 }
0x1017   :  { %2821 = vrot.lane.b32.xlu0 %v2820_v43, %s2983_s24  ;;  %2816 = vrot.lane.b32.xlu1 %v2820_v43, %s2984_s1 }
0x101b   :  { %2826 = vrot.lane.b32.xlu1 %v2820_v43, %s2986_s25  ;;  %1497 = vrot.lane.b32.xlu0 %v1469_v44, %s2982_s3 }
0x101f   :  { %2831 = vrot.lane.b32.xlu0 %v2830_v3, %s2984_s1 }
0x1089   :  { %v2822_v46 = vpop.permute.xlu0 %2821  ;;  %v2817_v47 = vpop.permute.xlu1 %2816 }
0x108a   :  { %v2819_v15 = vunpack.i.h.bf16 %v2817_v47  ;;  %v2818_v48 = vunpack.i.l.bf16 %v2817_v47  ;;  %v2824_v16 = vunpack.i.h.bf16 %v2822_v46  ;;  %v2823_v49 = vunpack.i.l.bf16 %v2822_v46 }
0x108c   :  { %v1470_v50 = vpack.c.bf16 %v2819_v15, %v2818_v48  ;;  %v1471_v51 = vpack.c.bf16 %v2824_v16, %v2823_v49 }
0x108d   :  { %v2827_v52 = vpop.permute.xlu1 %2826  ;;  %v1498_v54 = vpop.permute.xlu0 %1497 }
0x108e   :  { %v2829_v53 = vunpack.i.h.bf16 %v2827_v52  ;;  %v2828_v56 = vunpack.i.l.bf16 %v2827_v52  ;;  %v1503_v57 = vsel %vm399_vm2, %v1498_v54, 0  ;;  %1547 = vrot.lane.b32.xlu1 %v1470_v50, %s2982_s3 }
0x108f   :  { %2656 = vmatpush3.bf16.xpose.msra.mxu0 %v1503_v57 }
0x1090   :  { %v1472_v58 = vpack.c.bf16 %v2829_v53, %v2828_v56  ;;  %2667 = vmatprep.subr.bf16.mxu0 %v2979_v14 }
0x1091   :  { %v2832_v55 = vpop.permute.xlu0 %2831 }
0x1092   :  { %1597 = vrot.lane.b32.xlu1 %v1471_v51, %s2982_s3  ;;  %1647 = vrot.lane.b32.xlu0 %v1472_v58, %s2982_s3  ;;  %v2834_v62 = vunpack.i.h.bf16 %v2832_v55  ;;  %v2833_v63 = vunpack.i.l.bf16 %v2832_v55 }
0x1094   :  { %v1446_v9 = vpack.c.bf16 %v2834_v62, %v2833_v63 }
0x1096   :  { %2836 = vrot.lane.b32.xlu1 %v2830_v3, %s2983_s24  ;;  %2841 = vrot.lane.b32.xlu0 %v2830_v3, %s2986_s25 }
0x1097   :  { %2658 = vmatmul.mubr.msk.bf16.vlgmr.msra.gmra.mrb[32].mxu0 %vm399_vm2, %v1445_v30 }
0x1098   :  { %2669 = vmatprep.mubr.msk.bf16.mxu0 %vm2980_vm1, %v2979_v14 }
0x1100   :  { %v1548_v59 = vpop.permute.xlu1 %1547 }
0x1101   :  { %v1553_v60 = vsel %vm399_vm2, %v1548_v59, 0 }
0x1102   :  { %2662 = vmatpush3.bf16.xpose.msra.mxu1 %v1553_v60 }
0x1103   :  { %2673 = vmatprep.subr.bf16.mxu1 %v2979_v14 }
0x1104   :  { %v1598_v2 = vpop.permute.xlu1 %1597  ;;  %v1648_v4 = vpop.permute.xlu0 %1647 }
0x1105   :  { %v1603_v5 = vsel %vm399_vm2, %v1598_v2, 0  ;;  %v1653_v13 = vsel %vm399_vm2, %v1648_v4, 0 }
0x1106   :  { %2668 = vmatpush3.bf16.xpose.msra.mxu0 %v1603_v5 }
0x1107   :  { %2679 = vmatprep.subr.bf16.mxu0 %v2979_v14 }
0x1108   :  { %v2837_v10 = vpop.permute.xlu1 %2836  ;;  %v2842_v11 = vpop.permute.xlu0 %2841 }
0x1109   :  { %v2839_v18 = vunpack.i.h.bf16 %v2837_v10  ;;  %v2838_v42 = vunpack.i.l.bf16 %v2837_v10  ;;  %2664 = vmatmul.mubr.msk.bf16.vlgmr.msra.gmra.mrb[36].mxu1 %vm399_vm2, %v1446_v9  ;;  %v2844_v19 = vunpack.i.h.bf16 %v2842_v11  ;;  %v2843_v21 = vunpack.i.l.bf16 %v2842_v11 }
0x110a   :  { %2674 = vmatpush3.bf16.xpose.msra.mxu1 %v1653_v13  ;;  %2675 = vmatprep.mubr.msk.bf16.mxu1 %vm2980_vm1, %v2979_v14 }
0x110b   :  { %v1447_v1 = vpack.c.bf16 %v2839_v18, %v2838_v42  ;;  %2685 = vmatprep.subr.bf16.mxu1 %v2979_v14  ;;  %v1448_v45 = vpack.c.bf16 %v2844_v19, %v2843_v21 }
0x110d   :  { %2670 = vmatmul.mubr.msk.bf16.vlgmr.msra.gmra.mrb[36].mxu0 %vm399_vm2, %v1447_v1 }
0x110e   :  { %2681 = vmatprep.mubr.msk.bf16.mxu0 %vm2980_vm1, %v2979_v14 }
0x1111   :  { %2676 = vmatmul.mubr.msk.bf16.vlgmr.msra.gmra.mrb[40].mxu1 %vm399_vm2, %v1448_v45 }
0x1112   :  { %2687 = vmatprep.mubr.msk.bf16.mxu1 %vm2980_vm1, %v2979_v14 }
0x116a   :  { %v1539_v22 = vpop.f32.mrb[32].mxu0 }
0x116b   :  { %v1540_v23 = vadd.f32 %v1539_v22, %v3254_v6  ;;  %v2659_v24 = vpop.f32.mrb[33].mxu0 }
0x116c   :  { %v1542_v17 = vpop.f32.mrb[34].mxu0 }
0x116d   :  { %v1543_v20 = vadd.f32 %v1542_v17, %v3256_v8  ;;  %v2660_v27 = vpop.f32.mrb[35].mxu0  ;;  %v1696_v28 = vsel %vm597_vm5, %v1540_v23, -inf }
0x116e   :  { %1697 = vmax.xlane.f32.xlu1 %v1696_v28 }
0x116f   :  { %v1699_v29 = vsel %vm597_vm5, %v1543_v20, -inf }
0x1170   :  { %1700 = vmax.xlane.f32.xlu0 %v1699_v29 }
0x11dc   :  { %v1589_v30 = vpop.f32.mrb[36].mxu1 }
0x11dd   :  { %v1590_v3 = vadd.f32 %v1589_v30, %v3254_v6  ;;  %v2665_v31 = vpop.f32.mrb[37].mxu1 }
0x11de   :  { %v1592_v32 = vpop.f32.mrb[38].mxu1 }
0x11df   :  { %v1593_v33 = vadd.f32 %v1592_v32, %v3256_v8  ;;  %v2666_v7 = vpop.f32.mrb[39].mxu1  ;;  %v1702_v34 = vsel %vm597_vm5, %v1590_v3, -inf }
0x11e0   :  { %1703 = vmax.xlane.f32.xlu0 %v1702_v34  ;;  %v1639_v35 = vpop.f32.mrb[36].mxu0 }
0x11e1   :  { %v1640_v36 = vadd.f32 %v1639_v35, %v3254_v6  ;;  %v2671_v37 = vpop.f32.mrb[37].mxu0  ;;  %v1705_v41 = vsel %vm597_vm5, %v1593_v33, -inf }
0x11e2   :  { %v1642_v38 = vpop.f32.mrb[38].mxu0 }
0x11e3   :  { %v1643_v39 = vadd.f32 %v1642_v38, %v3256_v8  ;;  %v2672_v40 = vpop.f32.mrb[39].mxu0  ;;  %v1708_v43 = vsel %vm597_vm5, %v1640_v36, -inf }
0x11e4   :  { %v1689_v44 = vpop.f32.mrb[40].mxu1  ;;  %1706 = vmax.xlane.f32.xlu0 %v1705_v41  ;;  %1709 = vmax.xlane.f32.xlu1 %v1708_v43 }
0x11e5   :  { %v1690_v46 = vadd.f32 %v1689_v44, %v3254_v6  ;;  %v2677_v47 = vpop.f32.mrb[41].mxu1  ;;  %v1711_v50 = vsel %vm597_vm5, %v1643_v39, -inf }
0x11e6   :  { %v1692_v15 = vpop.f32.mrb[42].mxu1 }
0x11e7   :  { %v3589_v48 = vadd.f32 %v1692_v15, %v3256_v8  ;;  %v2678_v16 = vpop.f32.mrb[43].mxu1  ;;  %v1714_v49 = vsel %vm597_vm5, %v1690_v46, -inf }
0x11e8   :  { %1715 = vmax.xlane.f32.xlu1 %v1714_v49  ;;  %1712 = vmax.xlane.f32.xlu0 %v1711_v50 }
0x11e9   :  { %v1717_v52 = vsel %vm597_vm5, %v3589_v48, -inf }
0x11ec   :  { %1718 = vmax.xlane.f32.xlu0 %v1717_v52 }
0x11f9   :  { %2846 = vrot.lane.b32.xlu1 %v3515_v0, %s2984_s1  ;;  %s3841_s1 = smov 16  }
0x11fb   :  { %v1698_v6 = vpop.xlane.xlu1 %1697 }
0x11fc   :  { %v1720_v54 = vsub.f32 %v1540_v23, %v1698_v6 }
0x11fd   :  { %2856 = vrot.lane.b32.xlu1 %v3515_v0, %s2986_s25  ;;  %v1701_v8 = vpop.xlane.xlu0 %1700 }
0x11fe   :  { %v1721_v53 = vsub.f32 %v1543_v20, %v1701_v8  ;;  %v1728_v56 = vmul.f32 1.442695, %v1720_v54 }
0x1200   :  { %v1730_v57 = vmul.f32 1.442695, %v1721_v53  ;;  %2927 = vpow2.f32 %v1728_v56 }
0x1202   :  { %2851 = vrot.lane.b32.xlu0 %v3515_v0, %s2983_s24  ;;  %2929 = vpow2.f32 %v1730_v57  ;;  %s3840_s24 = smov 8  }
0x120a   :  { %v3601_v51 = vpop.eup %2927 }
0x120b   :  { %v1744_v55 = vsel %vm597_vm5, %v3601_v51, 0.0 }
0x120c   :  { %v3603_v58 = vpop.eup %2929 }
0x120d   :  { %v1747_v59 = vsel %vm597_vm5, %v3603_v58, 0.0 }
0x1221   :  { %1745 = vadd.xlane.f32.xlu1 %v1744_v55  ;;  %1748 = vadd.xlane.f32.xlu0 %v1747_v59 }
0x126d   :  { %v1704_v0 = vpop.xlane.xlu0 %1703 }
0x126e   :  { %v1722_v60 = vsub.f32 %v1590_v3, %v1704_v0 }
0x1270   :  { %v1732_v62 = vmul.f32 1.442695, %v1722_v60 }
0x1271   :  { %v1707_v63 = vpop.xlane.xlu0 %1706  ;;  %v1710_v2 = vpop.xlane.xlu1 %1709 }
0x1272   :  { %2931 = vpow2.f32 %v1732_v62  ;;  %v1723_v4 = vsub.f32 %v1593_v33, %v1707_v63  ;;  %v1724_v5 = vsub.f32 %v1640_v36, %v1710_v2 }
0x1274   :  { %v1734_v9 = vmul.f32 1.442695, %v1723_v4  ;;  %v1736_v10 = vmul.f32 1.442695, %v1724_v5 }
0x1275   :  { %v1716_v11 = vpop.xlane.xlu1 %1715  ;;  %v1713_v13 = vpop.xlane.xlu0 %1712 }
0x1276   :  { %2933 = vpow2.f32 %v1734_v9  ;;  %v1726_v18 = vsub.f32 %v1690_v46, %v1716_v11  ;;  %v1725_v42 = vsub.f32 %v1643_v39, %v1713_v13 }
0x1277   :  { %2935 = vpow2.f32 %v1736_v10 }
0x1278   :  { %v1740_v1 = vmul.f32 1.442695, %v1726_v18  ;;  %v1738_v19 = vmul.f32 1.442695, %v1725_v42 }
0x1279   :  { %v1719_v30 = vpop.xlane.xlu0 %1718  ;;  %v2847_v3 = vpop.permute.xlu1 %2846 }
0x127a   :  { %2937 = vpow2.f32 %v1740_v1  ;;  %v2849_v31 = vunpack.i.h.bf16 %v2847_v3  ;;  %v2848_v32 = vunpack.i.l.bf16 %v2847_v3  ;;  %v1727_v37 = vsub.f32 %v3589_v48, %v1719_v30 }
0x127b   :  { %2939 = vpow2.f32 %v1738_v19 }
0x127c   :  { %v3609_v21 = vpop.eup %2931  ;;  %v1493_v7 = vpack.c.bf16 %v2849_v31, %v2848_v32  ;;  %v1742_v38 = vmul.f32 1.442695, %v1727_v37 }
0x127d   :  { %v1750_v45 = vsel %vm597_vm5, %v3609_v21, 0.0  ;;  %v2852_v33 = vpop.permute.xlu0 %2851  ;;  %v2857_v41 = vpop.permute.xlu1 %2856 }
0x127e   :  { %1751 = vadd.xlane.f32.xlu0 %v1750_v45  ;;  %v2854_v34 = vunpack.i.h.bf16 %v2852_v33  ;;  %v2853_v35 = vunpack.i.l.bf16 %v2852_v33  ;;  %2941 = vpow2.f32 %v1742_v38  ;;  %v2859_v43 = vunpack.i.h.bf16 %v2857_v41 }
0x127f   :  { %v2858_v44 = vunpack.i.l.bf16 %v2857_v41 }
0x1280   :  { %v2934_v22 = vpop.eup %2933  ;;  %v1494_v36 = vpack.c.bf16 %v2854_v34, %v2853_v35  ;;  %v2407_v34 = vld [vmem:[%s3811_s10 + $0x30] sm:$0xff]  ;;  %v2408_v35 = vld [vmem:[%s3811_s10 + $0x38] sm:$0xff] }
0x1281   :  { %v3613_v23 = vpop.eup %2935  ;;  %v1753_v24 = vsel %vm597_vm5, %v2934_v22, 0.0  ;;  %v1495_v46 = vpack.c.bf16 %v2859_v43, %v2858_v44 }
0x1282   :  { %1754 = vadd.xlane.f32.xlu1 %v1753_v24  ;;  %v1756_v17 = vsel %vm597_vm5, %v3613_v23, 0.0 }
0x1283   :  { %1757 = vadd.xlane.f32.xlu0 %v1756_v17 }
0x1284   :  { %v3618_v20 = vpop.eup %2937 }
0x1285   :  { %v3620_v27 = vpop.eup %2939  ;;  %v1762_v28 = vsel %vm597_vm5, %v3618_v20, 0.0 }
0x1286   :  { %v1759_v29 = vsel %vm597_vm5, %v3620_v27, 0.0 }
0x1287   :  { %1763 = vadd.xlane.f32.xlu0 %v1762_v28  ;;  %1760 = vadd.xlane.f32.xlu1 %v1759_v29 }
0x1288   :  { %v2942_v39 = vpop.eup %2941 }
0x1289   :  { %v1765_v40 = vsel %vm597_vm5, %v2942_v39, 0.0 }
0x1298   :  { %1836 = vrot.lane.b32.xlu1 %v1493_v7, %s2988_s5 }
0x129c   :  { %1884 = vrot.lane.b32.xlu1 %v1494_v36, %s2988_s5  ;;  %v2016_v36 = vpack.c.bf16 %v2408_v35, %v2407_v34  ;;  %v2415_v35 = vld [vmem:[%s3815_s13 + $0x1] ss:$0 sm:$0xff] }
0x129d   :  { %1788 = vrot.lane.b32.xlu0 %v3513_v12, %s2988_s5 }
0x12ae   :  { %v1746_v47 = vpop.xlane.xlu1 %1745  ;;  %v1749_v15 = vpop.xlane.xlu0 %1748 }
0x12af   :  { %2943 = vrcp.f32 %v1746_v47 }
0x12b0   :  { %2945 = vrcp.f32 %v1749_v15 }
0x12b9   :  { %v2944_v49 = vpop.eup %2943 }
0x12ba   :  { %v2946_v50 = vpop.eup %2945  ;;  %v1776_v8 = vmul.f32 %v2944_v49, %v3601_v51 }
0x12bb   :  { %v1777_v54 = vmul.f32 %v2946_v50, %v3603_v58 }
0x12bd   :  { %v1784_v59 = vpack.c.bf16 %v1777_v54, %v1776_v8 }
0x12c0   :  { %1766 = vadd.xlane.f32.xlu1 %v1765_v40 }
0x12d1   :  { %1932 = vrot.lane.b32.xlu1 %v1495_v46, %s2988_s5 }
0x130b   :  { %v1752_v16 = vpop.xlane.xlu0 %1751 }
0x130c   :  { %2947 = vrcp.f32 %v1752_v16 }
0x130f   :  { %v1755_v12 = vpop.xlane.xlu1 %1754 }
0x1310   :  { %2949 = vrcp.f32 %v1755_v12  ;;  %v1758_v48 = vpop.xlane.xlu0 %1757 }
0x1311   :  { %2951 = vrcp.f32 %v1758_v48 }
0x1314   :  { %v1761_v52 = vpop.xlane.xlu1 %1760  ;;  %v1764_v6 = vpop.xlane.xlu0 %1763 }
0x1315   :  { %2953 = vrcp.f32 %v1761_v52 }
0x1316   :  { %v2948_v53 = vpop.eup %2947  ;;  %2955 = vrcp.f32 %v1764_v6 }
0x1317   :  { %v1778_v0 = vmul.f32 %v2948_v53, %v3609_v21 }
0x1318   :  { %v1837_v56 = vpop.permute.xlu1 %1836  ;;  %v1789_v57 = vpop.permute.xlu0 %1788 }
0x1319   :  { %2680 = vmatpush3.bf16.msra.mxu0 %v1789_v57  ;;  %2686 = vmatpush3.bf16.msra.mxu1 %v1837_v56 }
0x131a   :  { %v2950_v55 = vpop.eup %2949  ;;  %2691 = vmatprep.subr.bf16.mxu0 %v2979_v14  ;;  %2697 = vmatprep.subr.bf16.mxu1 %v2979_v14 }
0x131b   :  { %v1779_v60 = vmul.f32 %v2950_v55, %v2934_v22  ;;  %v2952_v51 = vpop.eup %2951  ;;  %v2405_v22 = vld [vmem:[%s3811_s10 + $0x20] sm:$0xff] }
0x131c   :  { %2682 = vmatmul.mubr.msk.bf16.vlgmr.msra.gmra.mrb[40].mxu0 %vm597_vm5, %v1784_v59  ;;  %v1885_v62 = vpop.permute.xlu1 %1884  ;;  %v1780_v2 = vmul.f32 %v2952_v51, %v3613_v23  ;;  %v2406_v23 = vld [vmem:[%s3811_s10 + $0x28] sm:$0xff]  ;;  %v2411_v55 = vld [vmem:[%s3812_s11 + $0x1] ss:$0 sm:$0xff] }
0x131d   :  { %2692 = vmatpush3.bf16.msra.mxu0 %v1885_v62  ;;  %v1785_v58 = vpack.c.bf16 %v1779_v60, %v1778_v0  ;;  %2693 = vmatprep.mubr.msk.bf16.mxu0 %vm2980_vm1, %v2979_v14 }
0x131e   :  { %2703 = vmatprep.subr.bf16.mxu0 %v2979_v14 }
0x131f   :  { %v2954_v63 = vpop.eup %2953  ;;  %2688 = vmatmul.mubr.msk.bf16.vlgmr.msra.gmra.mrb[44].mxu1 %vm597_vm5, %v1785_v58 }
0x1320   :  { %v1781_v4 = vmul.f32 %v2954_v63, %v3620_v27  ;;  %2699 = vmatprep.mubr.msk.bf16.mxu1 %vm2980_vm1, %v2979_v14  ;;  %v2956_v11 = vpop.eup %2955 }
0x1321   :  { %v1782_v18 = vmul.f32 %v2956_v11, %v3618_v20  ;;  %v2015_v20 = vpack.c.bf16 %v2406_v23, %v2405_v22  ;;  %v2418_v22 = vld [vmem:[%s3813_s14 + $0x30] sm:$0xff]  ;;  %v2419_v23 = vld [vmem:[%s3813_s14 + $0x38] sm:$0xff] }
0x1322   :  { %v1786_v5 = vpack.c.bf16 %v1781_v4, %v1780_v2 }
0x1324   :  { %2694 = vmatmul.mubr.msk.bf16.vlgmr.msra.gmra.mrb[44].mxu0 %vm597_vm5, %v1786_v5 }
0x1325   :  { %2707 = vmatprep.mubr.msk.bf16.mxu0 %vm2980_vm1, %v2979_v14  ;;  %2704 = vmatpush3.bf16.msra.mxu0 %v2015_v20 }
0x1326   :  { %2705 = vmatprep.subr.bf16.mxu0 %v2979_v14 }
0x1329   :  { %2706 = vmatpush3.bf16.msra.mxu0 %v2016_v36 }
0x132a   :  { %2719 = vmatprep.subr.bf16.mxu0 %v2979_v14 }
0x134d   :  { %v1767_v9 = vpop.xlane.xlu1 %1766 }
0x134e   :  { %2957 = vrcp.f32 %v1767_v9 }
0x1351   :  { %v1933_v10 = vpop.permute.xlu1 %1932 }
0x1352   :  { %2698 = vmatpush3.bf16.msra.mxu1 %v1933_v10 }
0x1353   :  { %2711 = vmatprep.subr.bf16.mxu1 %v2979_v14 }
0x1358   :  { %v2958_v13 = vpop.eup %2957 }
0x1359   :  { %v1783_v42 = vmul.f32 %v2958_v13, %v2942_v39 }
0x135b   :  { %v1787_v1 = vpack.c.bf16 %v1783_v42, %v1782_v18 }
0x135d   :  { %2700 = vmatmul.mubr.msk.bf16.vlgmr.msra.gmra.mrb[48].mxu1 %vm597_vm5, %v1787_v1 }
0x135e   :  { %2715 = vmatprep.mubr.msk.bf16.mxu1 %vm2980_vm1, %v2979_v14 }
0x13ef   :  { %v1828_v19 = vpop.f32.mrb[40].mxu0 }
0x13f0   :  { %v2683_v21 = vpop.f32.mrb[41].mxu0 }
0x13f1   :  { %v1831_v45 = vpop.f32.mrb[42].mxu0  ;;  %v2417_v21 = vld [vmem:[%s3813_s14 + $0x28] sm:$0xff] }
0x13f2   :  { %v2684_v24 = vpop.f32.mrb[43].mxu0  ;;  %v1876_v17 = vpop.f32.mrb[44].mxu1 }
0x13f3   :  { %v2689_v27 = vpop.f32.mrb[45].mxu1  ;;  %v2126_v24 = vpack.c.bf16 %v2419_v23, %v2418_v22 }
0x13f4   :  { %v1879_v28 = vpop.f32.mrb[46].mxu1 }
0x13f5   :  { %v2860_v29 = vpack.i.bf16 %v1879_v28, %v1876_v17  ;;  %v2690_v30 = vpop.f32.mrb[47].mxu1 }
0x13f7   :  { %v1924_v3 = vpop.f32.mrb[44].mxu0  ;;  %2861 = vrot.lane.b32.xlu0 %v2860_v29, %s3840_s24 }
0x13f8   :  { %v2695_v31 = vpop.f32.mrb[45].mxu0 }
0x13f9   :  { %v1927_v32 = vpop.f32.mrb[46].mxu0 }
0x13fa   :  { %v2865_v33 = vpack.i.bf16 %v1927_v32, %v1924_v3  ;;  %v2696_v7 = vpop.f32.mrb[47].mxu0  ;;  %v2414_v32 = vld [vmem:[%s3814_s12 + $0x1] ss:$0 sm:$0xff] }
0x13fc   :  { %2866 = vrot.lane.b32.xlu1 %v2865_v33, %s3841_s1 }
0x1430   :  { %v1972_v37 = vpop.f32.mrb[48].mxu1 }
0x1431   :  { %v2701_v38 = vpop.f32.mrb[49].mxu1 }
0x1432   :  { %v1975_v39 = vpop.f32.mrb[50].mxu1 }
0x1433   :  { %v2870_v40 = vpack.i.bf16 %v1975_v39, %v1972_v37  ;;  %v2702_v41 = vpop.f32.mrb[51].mxu1 }
0x1434   :  { %v2424_v41 = vld [vmem:[%s3816_s16 + $0x88] sm:$0xff] }
0x1435   :  { %2871 = vrot.lane.b32.xlu0 %v2870_v40, %s3842_s27  ;;  %v2423_v40 = vld [vmem:[%s3816_s16 + $0x80] sm:$0xff] }
0x1469   :  { %v2862_v43 = vpop.permute.xlu0 %2861 }
0x146a   :  { %v2864_v46 = vunpack.i.h.bf16 %v2862_v43  ;;  %v2863_v47 = vunpack.i.l.bf16 %v2862_v43  ;;  %v2251_v43 = vpack.c.bf16 %v2424_v41, %v2423_v40 }
0x146c   :  { %v2003_v48 = vsel %vm399_vm2, %v1828_v19, %v2863_v47  ;;  %v2004_v49 = vsel %vm399_vm2, %v1831_v45, %v2864_v46  ;;  %v2416_v19 = vld [vmem:[%s3813_s14 + $0x20] sm:$0xff]  ;;  %v2426_v46 = vld [vmem:[%s3816_s16 + $0x98] sm:$0xff] }
0x146d   :  { %v2125_v45 = vpack.c.bf16 %v2417_v21, %v2416_v19 }
0x146e   :  { %v2867_v44 = vpop.permute.xlu1 %2866 }
0x146f   :  { %v2869_v15 = vunpack.i.h.bf16 %v2867_v44  ;;  %v2868_v16 = vunpack.i.l.bf16 %v2867_v44  ;;  %2712 = vmatpush3.bf16.msra.mxu1 %v2125_v45  ;;  %v2425_v44 = vld [vmem:[%s3816_s16 + $0x90] sm:$0xff] }
0x1470   :  { %2713 = vmatprep.subr.bf16.mxu1 %v2979_v14  ;;  %v2252_v47 = vpack.c.bf16 %v2426_v46, %v2425_v44 }
0x1471   :  { %v2006_v6 = vsel %vm597_vm5, %v2004_v49, %v2869_v15  ;;  %v2005_v8 = vsel %vm597_vm5, %v2003_v48, %v2868_v16  ;;  %v2427_v15 = vld [vmem:[%s3816_s16 + $0xa0] sm:$0xff]  ;;  %v2428_v16 = vld [vmem:[%s3816_s16 + $0xa8] sm:$0xff]  ;;  %v2429_v48 = vld [vmem:[%s3816_s16 + $0xb0] sm:$0xff] }
0x1472   :  { %v2430_v49 = vld [vmem:[%s3816_s16 + $0xb8] sm:$0xff] }
0x1473   :  { %2714 = vmatpush3.bf16.msra.mxu1 %v2126_v24 }
0x14a7   :  { %v2872_v12 = vpop.permute.xlu0 %2871 }
0x14a8   :  { %v2874_v50 = vunpack.i.h.bf16 %v2872_v12  ;;  %v2873_v52 = vunpack.i.l.bf16 %v2872_v12  ;;  %v2253_v12 = vpack.c.bf16 %v2428_v16, %v2427_v15 }
0x14aa   :  { %v2007_v54 = vsel %vm909_vm6, %v2005_v8, %v2873_v52  ;;  %v2008_v53 = vsel %vm909_vm6, %v2006_v6, %v2874_v50  ;;  %v2254_v50 = vpack.c.bf16 %v2430_v49, %v2429_v48  ;;  %v2431_v52 = vld [vmem:[%s3816_s16 + $0xc0] sm:$0xff]  ;;  %v2432_v6 = vld [vmem:[%s3816_s16 + $0xc8] sm:$0xff] }
0x14ab   :  { %v2014_v56 = vpack.c.bf16 %v2008_v53, %v2007_v54  ;;  %v2255_v8 = vpack.c.bf16 %v2432_v6, %v2431_v52  ;;  %v2433_v54 = vld [vmem:[%s3816_s16 + $0xd0] sm:$0xff]  ;;  %v2434_v53 = vld [vmem:[%s3816_s16 + $0xd8] sm:$0xff] }
0x14ad   :  { %2708 = vmatmul.mubr.msk.bf16.vlgmr.msra.gmra.mrb[48].mxu0 %vm103_vm0, %v2014_v56  ;;  %v2256_v56 = vpack.c.bf16 %v2434_v53, %v2433_v54 }
0x14ae   :  { %2735 = vmatprep.mubr.msk.bf16.mxu0 %vm2980_vm1, %v2979_v14  ;;  %2720 = vmatpush3.bf16.msra.mxu0 %v2251_v43 }
0x14af   :  { %2721 = vmatprep.subr.bf16.mxu0 %v2979_v14 }
0x14b2   :  { %2722 = vmatpush3.bf16.msra.mxu0 %v2252_v47 }
0x14b3   :  { %2723 = vmatprep.subr.bf16.mxu0 %v2979_v14 }
0x14b6   :  { %2724 = vmatpush3.bf16.msra.mxu0 %v2253_v12 }
0x14b7   :  { %2725 = vmatprep.subr.bf16.mxu0 %v2979_v14 }
0x14ba   :  { %2726 = vmatpush3.bf16.msra.mxu0 %v2254_v50 }
0x14bb   :  { %2727 = vmatprep.subr.bf16.mxu0 %v2979_v14 }
0x14be   :  { %2728 = vmatpush3.bf16.msra.mxu0 %v2255_v8 }
0x14bf   :  { %2729 = vmatprep.subr.bf16.mxu0 %v2979_v14 }
0x14c2   :  { %2730 = vmatpush3.bf16.msra.mxu0 %v2256_v56 }
0x14c3   :  { %2731 = vmatprep.subr.bf16.mxu0 %v2979_v14 }
0x1580   :  { %v2054_v57 = vpop.f32.mrb[48].mxu0 }
0x1581   :  { %v2061_v59 = vadd.f32 %v2054_v57, %v3470_v25  ;;  %v2709_v0 = vpop.f32.mrb[49].mxu0  ;;  %v2435_v57 = vld [vmem:[%s3816_s16 + $0xe0] sm:$0xff] }
0x1582   :  { %v2057_v60 = vpop.f32.mrb[50].mxu0  ;;  %v2437_v0 = vld [vmem:[%s3816_s16 + $0xf0] sm:$0xff] }
0x1583   :  { %v3685_v62 = vadd.f32 %v2411_v55, %v2061_v59  ;;  %v2062_v51 = vadd.f32 %v2057_v60, %v3473_v26  ;;  %v2710_v58 = vpop.f32.mrb[51].mxu0  ;;  %v2438_v60 = vld [vmem:[%s3816_s16 + $0xf8] sm:$0xff] }
0x1584   :  { %v2421_v58 = vld [vmem:[%s3817_s15 + $0x1] ss:$0 sm:$0xff] }
0x1585   :  { %v3688_v63 = vadd.f32 %v2411_v55, %v2062_v51  ;;  %v2077_v2 = vsel %vm103_vm0, %v3685_v62, 0.0  ;;  %v2436_v55 = vld [vmem:[%s3816_s16 + $0xe8] sm:$0xff]  ;;  %v2258_v51 = vpack.c.bf16 %v2438_v60, %v2437_v0  ;;  %v2440_v60 = vld [vmem:[%s3818_s17 + $0x1] ss:$0 sm:$0xff] }
0x1586   :  { %2078 = vadd.xlane.f32.xlu1 %v2077_v2  ;;  %v2257_v59 = vpack.c.bf16 %v2436_v55, %v2435_v57 }
0x1587   :  { %v2080_v4 = vsel %vm103_vm0, %v3688_v63, 0.0 }
0x1588   :  { %2081 = vadd.xlane.f32.xlu0 %v2080_v4  ;;  %2732 = vmatpush3.bf16.msra.mxu0 %v2257_v59 }
0x1589   :  { %2733 = vmatprep.subr.bf16.mxu0 %v2979_v14 }
0x158c   :  { %2734 = vmatpush3.bf16.msra.mxu0 %v2258_v51 }
0x1613   :  { %v2079_v5 = vpop.xlane.xlu1 %2078 }
0x1614   :  { %v2083_v9 = vmul.f32 0.03125, %v2079_v5 }
0x1615   :  { %v2082_v25 = vpop.xlane.xlu0 %2081 }
0x1616   :  { %v2085_v10 = vsub.f32 %v3685_v62, %v2083_v9  ;;  %v2084_v11 = vmul.f32 0.03125, %v2082_v25 }
0x1618   :  { %v2086_v13 = vsub.f32 %v3688_v63, %v2084_v11  ;;  %v2087_v26 = vmul.f32 %v2085_v10, %v2085_v10 }
0x161a   :  { %v2089_v18 = vsel %vm103_vm0, %v2087_v26, 0.0  ;;  %v2088_v42 = vmul.f32 %v2086_v13, %v2086_v13 }
0x161b   :  { %2090 = vadd.xlane.f32.xlu0 %v2089_v18 }
0x161c   :  { %v2092_v1 = vsel %vm103_vm0, %v2088_v42, 0.0 }
0x161f   :  { %2093 = vadd.xlane.f32.xlu0 %v2092_v1 }
0x16a8   :  { %v2091_v17 = vpop.xlane.xlu0 %2090 }
0x16a9   :  { %v2095_v20 = vmul.f32 0.03125, %v2091_v17 }
0x16ab   :  { %v2097_v27 = vadd.f32 1e-05, %v2095_v20 }
0x16ac   :  { %v2094_v28 = vpop.xlane.xlu0 %2093 }
0x16ad   :  { %2959 = vrsqrt.f32 %v2097_v27  ;;  %v2096_v29 = vmul.f32 0.03125, %v2094_v28 }
0x16af   :  { %v2098_v30 = vadd.f32 1e-05, %v2096_v29 }
0x16b1   :  { %2961 = vrsqrt.f32 %v2098_v30 }
0x16b7   :  { %v2960_v3 = vpop.eup %2959 }
0x16b8   :  { %v2101_v31 = vmul.f32 %v2960_v3, %v2085_v10 }
0x16ba   :  { %v2109_v7 = vmul.f32 %v2414_v32, %v2101_v31 }
0x16bb   :  { %v2962_v33 = vpop.eup %2961 }
0x16bc   :  { %v2102_v34 = vmul.f32 %v2962_v33, %v2086_v13  ;;  %v2117_v37 = vadd.f32 %v2415_v35, %v2109_v7 }
0x16be   :  { %v2110_v36 = vmul.f32 %v2414_v32, %v2102_v34 }
0x16c0   :  { %v2118_v38 = vadd.f32 %v2415_v35, %v2110_v36 }
0x16c2   :  { %v2124_v39 = vpack.c.bf16 %v2118_v38, %v2117_v37 }
0x16c4   :  { %2716 = vmatmul.mubr.msk.bf16.vlgmr.msra.gmra.mrb[52].mxu1 %vm103_vm0, %v2124_v39 }
0x1797   :  { %v2172_v2 = vpop.f32.mrb[52].mxu1 }
0x1798   :  { %v2173_v4 = vadd.f32 %v2421_v58, %v2172_v2  ;;  %v2717_v5 = vpop.f32.mrb[53].mxu1 }
0x1799   :  { %v2175_v9 = vpop.f32.mrb[54].mxu1 }
0x179a   :  { %v2181_v25 = vmul.f32 0.70710677, %v2173_v4  ;;  %v2176_v14 = vadd.f32 %v2421_v58, %v2175_v9  ;;  %v2718_v10 = vpop.f32.mrb[55].mxu1  ;;  %v2179_v54 = vmul.f32 0.5, %v2173_v4 }
0x179c   :  { %v2187_v11 = vand.u32 2147483647, %v2181_v25  ;;  %v2182_v13 = vmul.f32 0.70710677, %v2176_v14  ;;  %vm2183_vm9 = vcmp.ge.f32.partialorder %v2181_v25, 0.0  ;;  %v2180_v53 = vmul.f32 0.5, %v2176_v14 }
0x179d   :  { %v2185_v12 = vsel %vm2183_vm9, 1.0, %v2992_v61 }
0x179e   :  { %v2189_v26 = vmul.f32 0.3275911, %v2187_v11  ;;  %v2188_v18 = vand.u32 2147483647, %v2182_v13  ;;  %v2215_v21 = vmul.f32 %v2187_v11, %v2187_v11  ;;  %vm2184_vm10 = vcmp.ge.f32.partialorder %v2182_v13, 0.0 }
0x179f   :  { %v2186_v52 = vsel %vm2184_vm10, 1.0, %v2992_v61 }
0x17a0   :  { %v2191_v42 = vadd.f32 1.0, %v2189_v26  ;;  %v2190_v1 = vmul.f32 0.3275911, %v2188_v18  ;;  %v2216_v45 = vmul.f32 %v2188_v18, %v2188_v18  ;;  %v2217_v23 = vsub.f32 0.0, %v2215_v21 }
0x17a2   :  { %2963 = vrcp.f32 %v2191_v42  ;;  %v2192_v19 = vadd.f32 1.0, %v2190_v1  ;;  %v2218_v27 = vsub.f32 0.0, %v2216_v45  ;;  %v2219_v28 = vmul.f32 1.442695, %v2217_v23 }
0x17a4   :  { %2965 = vrcp.f32 %v2192_v19  ;;  %v2221_v32 = vmul.f32 1.442695, %v2218_v27  ;;  %v2441_v27 = vld [vmem:[%s3819_s18] ss:$0 sm:$0xff] }
0x17a5   :  { %2967 = vpow2.f32 %v2219_v28 }
0x17a6   :  { %2969 = vpow2.f32 %v2221_v32 }
0x17ac   :  { %v2964_v22 = vpop.eup %2963 }
0x17ad   :  { %v2197_v24 = vmul.f32 1.0614054, %v2964_v22 }
0x17ae   :  { %v2966_v17 = vpop.eup %2965 }
0x17af   :  { %v2199_v20 = vadd.f32 -1.4531521, %v2197_v24  ;;  %v2198_v29 = vmul.f32 1.0614054, %v2966_v17  ;;  %v2968_v43 = vpop.eup %2967 }
0x17b0   :  { %v2970_v15 = vpop.eup %2969 }
0x17b1   :  { %v2201_v30 = vmul.f32 %v2964_v22, %v2199_v20  ;;  %v2200_v3 = vadd.f32 -1.4531521, %v2198_v29 }
0x17b3   :  { %v2203_v31 = vadd.f32 1.4214138, %v2201_v30  ;;  %v2202_v33 = vmul.f32 %v2966_v17, %v2200_v3  ;;  %v2442_v30 = vld [vmem:[%s3820_s19] ss:$0 sm:$0xff] }
0x17b5   :  { %v2205_v7 = vmul.f32 %v2964_v22, %v2203_v31  ;;  %v2204_v34 = vadd.f32 1.4214138, %v2202_v33 }
0x17b7   :  { %v2207_v35 = vadd.f32 -0.28449672, %v2205_v7  ;;  %v2206_v36 = vmul.f32 %v2966_v17, %v2204_v34 }
0x17b9   :  { %v2209_v37 = vmul.f32 %v2964_v22, %v2207_v35  ;;  %v2208_v38 = vadd.f32 -0.28449672, %v2206_v36 }
0x17bb   :  { %v2211_v39 = vadd.f32 0.2548296, %v2209_v37  ;;  %v2210_v40 = vmul.f32 %v2966_v17, %v2208_v38 }
0x17bd   :  { %v2213_v41 = vmul.f32 %v2964_v22, %v2211_v39  ;;  %v2212_v44 = vadd.f32 0.2548296, %v2210_v40 }
0x17bf   :  { %v2223_v46 = vmul.f32 %v2968_v43, %v2213_v41  ;;  %v2214_v47 = vmul.f32 %v2966_v17, %v2212_v44 }
0x17c1   :  { %v2225_v16 = vsub.f32 1.0, %v2223_v46  ;;  %v2224_v48 = vmul.f32 %v2970_v15, %v2214_v47 }
0x17c3   :  { %v2227_v49 = vmul.f32 %v2225_v16, %v2185_v12  ;;  %v2226_v50 = vsub.f32 1.0, %v2224_v48 }
0x17c5   :  { %v2229_v6 = vadd.f32 1.0, %v2227_v49  ;;  %v2228_v8 = vmul.f32 %v2226_v50, %v2186_v52 }
0x17c7   :  { %v2230_v56 = vadd.f32 1.0, %v2228_v8  ;;  %v2231_v57 = vmul.f32 %v2229_v6, %v2179_v54 }
0x17c9   :  { %v2232_v55 = vmul.f32 %v2230_v56, %v2180_v53 }
0x17cb   :  { %v2250_v59 = vpack.c.bf16 %v2232_v55, %v2231_v57 }
0x17cd   :  { %2736 = vmatmul.mubr.bf16.vlgmr.msra.gmra.mrb[52].mxu0 %v2250_v59 }
0x18a0   :  { %v2293_v0 = vpop.f32.mrb[52].mxu0 }
0x18a1   :  { %v2300_v51 = vadd.f32 %v2293_v0, %v3685_v62  ;;  %v2737_v58 = vpop.f32.mrb[53].mxu0 }
0x18a2   :  { %v2296_v2 = vpop.f32.mrb[54].mxu0 }
0x18a3   :  { %v2310_v5 = vadd.f32 %v2440_v60, %v2300_v51  ;;  %v2301_v61 = vadd.f32 %v2296_v2, %v3688_v63  ;;  %v2738_v9 = vpop.f32.mrb[55].mxu0 }
0x18a5   :  { %v2311_v4 = vadd.f32 %v2440_v60, %v2301_v61  ;;  %v2314_v25 = vsel %vm103_vm0, %v2310_v5, 0.0 }
0x18a6   :  { %2315 = vadd.xlane.f32.xlu1 %v2314_v25 }
0x18a7   :  { %v2317_v14 = vsel %vm103_vm0, %v2311_v4, 0.0 }
0x18a8   :  { %2318 = vadd.xlane.f32.xlu0 %v2317_v14 }
0x1933   :  { %v2316_v10 = vpop.xlane.xlu1 %2315 }
0x1934   :  { %v2320_v11 = vmul.f32 0.03125, %v2316_v10 }
0x1935   :  { %v2319_v13 = vpop.xlane.xlu0 %2318 }
0x1936   :  { %v2322_v26 = vsub.f32 %v2310_v5, %v2320_v11  ;;  %v2321_v18 = vmul.f32 0.03125, %v2319_v13 }
0x1938   :  { %v2323_v42 = vsub.f32 %v2311_v4, %v2321_v18  ;;  %v2324_v62 = vmul.f32 %v2322_v26, %v2322_v26 }
0x193a   :  { %v2326_v1 = vsel %vm103_vm0, %v2324_v62, 0.0  ;;  %v2325_v19 = vmul.f32 %v2323_v42, %v2323_v42 }
0x193b   :  { %2327 = vadd.xlane.f32.xlu1 %v2326_v1 }
0x193c   :  { %v2329_v63 = vsel %vm103_vm0, %v2325_v19, 0.0 }
0x193d   :  { %2330 = vadd.xlane.f32.xlu0 %v2329_v63 }
0x19c8   :  { %v2328_v21 = vpop.xlane.xlu1 %2327 }
0x19c9   :  { %v2332_v45 = vmul.f32 0.03125, %v2328_v21 }
0x19ca   :  { %v2331_v22 = vpop.xlane.xlu0 %2330 }
0x19cb   :  { %v2334_v23 = vadd.f32 1e-05, %v2332_v45  ;;  %v2333_v24 = vmul.f32 0.03125, %v2331_v22 }
0x19cd   :  { %2971 = vrsqrt.f32 %v2334_v23  ;;  %v2335_v17 = vadd.f32 1e-05, %v2333_v24 }
0x19cf   :  { %2973 = vrsqrt.f32 %v2335_v17 }
0x19d7   :  { %v2972_v20 = vpop.eup %2971 }
0x19d8   :  { %v2338_v28 = vmul.f32 %v2972_v20, %v2322_v26 }
0x19d9   :  { %v2974_v29 = vpop.eup %2973 }
0x19da   :  { %v2346_v3 = vmul.f32 %v2441_v27, %v2338_v28  ;;  %v2339_v31 = vmul.f32 %v2974_v29, %v2323_v42 }
0x19dc   :  { %v2354_v32 = vadd.f32 %v2442_v30, %v2346_v3  ;;  %v2347_v33 = vmul.f32 %v2441_v27, %v2339_v31 }
0x19de   :  { %2356 = vst.msk [vmem:[%s3821_s20] sm:$0xff] %vm103_vm0, %v2354_v32  ;;  %v2355_v7 = vadd.f32 %v2442_v30, %v2347_v33 }
0x19e0   :  { %2357 = vst.msk [vmem:[%s3821_s20 + $0x8] sm:$0xff] %vm103_vm0, %v2355_v7 }

</bundles_post_ra>
